<compile_context>
chip_gen: v7x
topology: tpu7x:2x2x1
jax: 0.10.0
libtpu: 0.0.40
codegen_flags: <defaults>
</compile_context>

<pallas_src>
import functools

import jax
import jax.numpy as jnp
from jax import lax
from jax.experimental import pallas as pl
from jax.experimental.pallas import tpu as pltpu


def _round_up(x, m):
    return ((x + m - 1) // m) * m


def _device_kind():
    try:
        return jax.devices()[0].device_kind.lower()
    except Exception:
        return ""


def _default_blocks(kind):
    if "v5" in kind:                      # bandwidth-limited: large tq, modest tk
        return 512, 128
    if "v6" in kind or "v7" in kind or "7x" in kind:
        return 512, 512
    return 512, 256                       # unknown chip: safe middle ground


def _vmem_limit(tq, tk, d_pad, c_pad):
    # Double-buffered in/out blocks + allowance for the (tq,tk) f32
    # intermediates the compiler keeps live; capped well under v7x's 64 MiB.
    blocks = (tq * d_pad * 2 + tk * d_pad * 2 + tq * c_pad * 2 + tk * c_pad * 2
              + tq * 4 + tk * 4 + tq * 4 + 4 * tq * 4)
    planes = tq * tk * 4
    est = 2 * blocks + 16 * planes + (8 << 20)
    return int(min(40 << 20, max(32 << 20, est)))


def _lcl_kernel(
    labels_q_ref,   # (tq, 1)   int32
    labels_k_ref,   # (1, tk)   int32
    feat_q_ref,     # (tq, Dp)  bf16, pre-scaled by 1/temperature
    feat_k_ref,     # (tk, Dp)  bf16
    w_q_ref,        # (tq, Cp)  bf16  per-anchor class weights
    oh_k_ref,       # (tk, Cp)  bf16  one-hot(labels) of the key tile
    out_ref,        # (tq, 1)   f32   per-row numerator (written on last step)
    m_sc, z_sc, s_sc, p_sc,             # (tq, 1) f32 scratch
    *, bf16_exp,
):
    qi = pl.program_id(0)
    ki = pl.program_id(1)

    @pl.when(ki == 0)
    def _init():
        m_sc[...] = jnp.full_like(m_sc, -jnp.inf)
        z_sc[...] = jnp.zeros_like(z_sc)
        s_sc[...] = jnp.zeros_like(s_sc)
        p_sc[...] = jnp.zeros_like(p_sc)

    dn = (((1,), (1,)), ((), ()))   # contract dim 1 of both operands -> A @ B.T

    # (tq, tk) scaled similarity tile: bf16 in, f32 accumulate on the MXU.
    # (1/temperature already folded into feat_q in the wrapper.)
    s = lax.dot_general(feat_q_ref[...], feat_k_ref[...], dn,
                        preferred_element_type=jnp.float32)
    tq, tk = s.shape

    # weighted_mask[i, j] = weights[i, labels[j]]  via bf16 MXU matmul.
    wmask = lax.dot_general(w_q_ref[...], oh_k_ref[...], dn,
                            preferred_element_type=jnp.float32)

    # Self-contrast (diagonal) exclusion with thin iotas; the broadcasted
    # compare is automatically all-True on tiles off the diagonal.
    rows = qi * tq + lax.broadcasted_iota(jnp.int32, (tq, 1), 0)
    cols = ki * tk + lax.broadcasted_iota(jnp.int32, (1, tk), 1)
    wmask = jnp.where(rows != cols, wmask, 0.0)

    # Positive-pair mask: VPU broadcast compare of int32 label vectors.
    same_label = labels_q_ref[...] == labels_k_ref[...]
    pos_wmask = jnp.where(same_label, wmask, 0.0)

    # Online weighted log-sum-exp + positive statistics.
    m_prev = m_sc[...]
    m_new = jnp.maximum(m_prev, jnp.max(s, axis=1, keepdims=True))
    if bf16_exp:
        exp_s = jnp.exp((s - m_new).astype(jnp.bfloat16)).astype(jnp.float32)
    else:
        exp_s = jnp.exp(s - m_new)
    alpha = jnp.exp(m_prev - m_new)
    z_sc[...] = alpha * z_sc[...] + jnp.sum(exp_s * wmask, axis=1, keepdims=True)
    s_sc[...] += jnp.sum(pos_wmask * s, axis=1, keepdims=True)
    p_sc[...] += jnp.sum(pos_wmask, axis=1, keepdims=True)
    m_sc[...] = m_new

    @pl.when(ki == pl.num_programs(1) - 1)
    def _finalize():
        # log( sum_j exp(adc_ij) * wmask_ij ), reconstructed from running stats.
        log_z = m_sc[...] + jnp.log(z_sc[...])
        # sum_j pos_wmask_ij * log_prob_ij  ==  S_raw - P * log_z
        out_ref[...] = s_sc[...] - p_sc[...] * log_z


def lcl_loss(features, labels, weights, temperature=0.07,
             block_q=None, block_k=None, feature_dtype=jnp.bfloat16,
             bf16_exp=None, vmem_limit_bytes=None):
    """features: (B, D) float, labels: (B,) int in [0, C), weights: (B, C)."""
    B, D = features.shape
    Bw, C = weights.shape
    assert Bw == B and labels.shape == (B,)

    kind = _device_kind()
    if block_q is None or block_k is None:
        dq, dk = _default_blocks(kind)
        block_q = block_q or dq
        block_k = block_k or dk
    if bf16_exp is None:
        bf16_exp = ("v6" in kind) or ("v7" in kind) or ("7x" in kind)

    # ---- tile sizes & padding (128-aligned, no lcm blow-up) -----------------
    assert block_q % 128 == 0 and block_k % 128 == 0, (
        "block_q / block_k must be multiples of 128")
    b128 = _round_up(B, 128)
    tq = min(block_q, b128)
    tk = min(block_k, b128)
    # Keep >= 2 query tiles when the batch allows (v7x has two TensorCores).
    if b128 > 128 and tq >= b128:
        tq = max(128, _round_up(b128 // 2, 128))
    # Keep padding bounded by max(tq, tk) (avoid lcm-based padding explosion).
    if max(tq, tk) % min(tq, tk) != 0:
        tk = tq
    b_pad = _round_up(B, max(tq, tk))
    d_pad = _round_up(D, 128)
    c_pad = _round_up(C, 128)

    f32 = jnp.float32
    bf16 = jnp.bfloat16
    labels = labels.astype(jnp.int32)

    # 1/temperature folded into the anchor features (B*D multiply here instead
    # of a B^2 multiply inside the inner loop).
    inv_temp = jnp.asarray(1.0 / temperature, f32)
    feat_q = jnp.zeros((b_pad, d_pad), feature_dtype).at[:B, :D].set(
        (features.astype(f32) * inv_temp).astype(feature_dtype))
    feat_k = jnp.zeros((b_pad, d_pad), feature_dtype).at[:B, :D].set(
        features.astype(feature_dtype))
    # bf16 weights / one-hot: MXU-native, f32 accumulate in the kernel.
    w = jnp.zeros((b_pad, c_pad), bf16).at[:B, :C].set(weights.astype(bf16))
    # Padded rows get unique negative labels -> no positives, zero one-hot row.
    lab = (-(jnp.arange(b_pad, dtype=jnp.int32) + 1)).at[:B].set(labels)
    onehot = (lab.reshape(b_pad, 1)
              == jnp.arange(c_pad, dtype=jnp.int32).reshape(1, c_pad)
              ).astype(bf16)

    # Per-row positive counts (mask.sum(1) in the reference), precomputed O(B).
    class_counts = jnp.zeros((C,), f32).at[labels].add(1.0)
    n_pos = jnp.zeros((b_pad,), f32).at[:B].set(class_counts[labels] - 1.0)

    if vmem_limit_bytes is None:
        vmem_limit_bytes = _vmem_limit(tq, tk, d_pad, c_pad)

    grid = (b_pad // tq, b_pad // tk)
    kernel = functools.partial(_lcl_kernel, bf16_exp=bf16_exp)

    num = pl.pallas_call(
        kernel,
        out_shape=jax.ShapeDtypeStruct((b_pad, 1), f32),
        grid_spec=pltpu.PrefetchScalarGridSpec(
            num_scalar_prefetch=0,
            grid=grid,
            in_specs=[
                pl.BlockSpec((tq, 1), lambda qi, ki: (qi, 0)),       # labels_q
                pl.BlockSpec((1, tk), lambda qi, ki: (0, ki)),       # labels_k
                pl.BlockSpec((tq, d_pad), lambda qi, ki: (qi, 0)),   # feat_q
                pl.BlockSpec((tk, d_pad), lambda qi, ki: (ki, 0)),   # feat_k
                pl.BlockSpec((tq, c_pad), lambda qi, ki: (qi, 0)),   # weights_q
                pl.BlockSpec((tk, c_pad), lambda qi, ki: (ki, 0)),   # onehot_k
            ],
            out_specs=pl.BlockSpec((tq, 1), lambda qi, ki: (qi, 0)),
            scratch_shapes=[pltpu.VMEM((tq, 1), f32)] * 4,
        ),
        compiler_params=pltpu.CompilerParams(
            dimension_semantics=("parallel", "arbitrary"),
            vmem_limit_bytes=vmem_limit_bytes,
        ),
    )(lab.reshape(b_pad, 1), lab.reshape(1, b_pad), feat_q, feat_k, w, onehot)

    num = num[:, 0]
    n_safe = jnp.where(n_pos > 0.0, n_pos, 1.0)
    # Rows with no positive pair (incl. padding rows) contribute exactly 0;
    # the PyTorch reference would produce NaN (0/0) for such real rows.
    per_row = jnp.where(n_pos > 0.0, -num / n_safe, 0.0)
    return jnp.sum(per_row) / B


def _lcl_reference(features, labels, weights, temperature=0.07):
    """Pure-JAX f32 transcription of the PyTorch module (for validation)."""
    f = features.astype(jnp.float32)
    B = f.shape[0]
    adc = (f @ f.T) / temperature
    lab = labels.reshape(-1, 1)
    mask = (lab == lab.T).astype(jnp.float32)
    logits_mask = 1.0 - jnp.eye(B, dtype=jnp.float32)
    mask = mask * logits_mask
    wmask = weights[:, labels] * logits_mask
    pos_wmask = wmask * mask
    logits_max = jnp.max(adc, axis=1, keepdims=True)
    logits = adc - logits_max
    exp_logits = jnp.exp(logits) * wmask
    log_prob = logits - jnp.log(exp_logits.sum(1, keepdims=True))
    mean_log_prob_pos = (pos_wmask * log_prob).sum(1) / mask.sum(1)
    return jnp.mean(-mean_log_prob_pos)


if __name__ == "__main__":
    key = jax.random.PRNGKey(0)
    B, D, C = 200, 32, 5
    kf, kw = jax.random.split(key, 2)

    features = jax.random.normal(kf, (B, D), dtype=jnp.float32)
    features = features / jnp.linalg.norm(features, axis=1, keepdims=True)
    labels = jnp.arange(B, dtype=jnp.int32) % C          # every row has positives
    weights = jax.random.uniform(kw, (B, C), dtype=jnp.float32,
                                 minval=0.1, maxval=1.0)

    # Small blocks to exercise the multi-tile online-logsumexp path (grid 2x2
    # after padding 200 -> 256); device-aware defaults are used for real sizes.
    loss = lcl_loss(features, labels, weights, block_q=128, block_k=128)
    loss = jax.block_until_ready(loss)

    ref = jax.block_until_ready(_lcl_reference(features, labels, weights))
    err = abs(float(loss) - float(ref))
    assert err <= 5e-2 + 3e-2 * abs(float(ref)), (float(loss), float(ref))

    print("KERNEL_OK")
</pallas_src>

<mosaic_0001>
module attributes {stable_mosaic.version = 11 : i64} {
  func.func @_lcl_kernel(%arg0: i32, %arg1: i32, %arg2: memref<128x1xi32, #tpu.memory_space<vmem>>, %arg3: memref<1x128xi32, #tpu.memory_space<vmem>>, %arg4: memref<128x128xbf16, #tpu.memory_space<vmem>>, %arg5: memref<128x128xbf16, #tpu.memory_space<vmem>>, %arg6: memref<128x128xbf16, #tpu.memory_space<vmem>>, %arg7: memref<128x128xbf16, #tpu.memory_space<vmem>>, %arg8: memref<128x1xf32, #tpu.memory_space<vmem>>, %arg9: memref<128x1xf32, #tpu.memory_space<vmem>>, %arg10: memref<128x1xf32, #tpu.memory_space<vmem>>, %arg11: memref<128x1xf32, #tpu.memory_space<vmem>>, %arg12: memref<128x1xf32, #tpu.memory_space<vmem>>) attributes {dimension_semantics = [#tpu.dimension_semantics<parallel>, #tpu.dimension_semantics<arbitrary>], iteration_bounds = array<i64: 2, 2>, scalar_prefetch = 0 : i64, scratch_operands = 4 : i64, tpu.core_type = #tpu.core_type<tc>, window_params = [{transform_indices = @transform_0, window_bounds = array<i64: 128, 1>}, {transform_indices = @transform_1, window_bounds = array<i64: 1, 128>}, {transform_indices = @transform_2, window_bounds = array<i64: 128, 128>}, {transform_indices = @transform_3, window_bounds = array<i64: 128, 128>}, {transform_indices = @transform_4, window_bounds = array<i64: 128, 128>}, {transform_indices = @transform_5, window_bounds = array<i64: 128, 128>}, {transform_indices = @transform_6, window_bounds = array<i64: 128, 1>}]} {
    %c0_i32 = arith.constant 0 : i32
    %0 = arith.cmpi eq, %arg1, %c0_i32 : i32
    %1 = arith.extui %0 : i1 to i32
    %c0_i32_0 = arith.constant 0 : i32
    %2 = arith.cmpi ne, %1, %c0_i32_0 : i32
    scf.if %2 {
      %cst_37 = arith.constant 0xFF800000 : f32
      %60 = vector.broadcast %cst_37 : f32 to vector<128x1xf32>
      %c0_38 = arith.constant 0 : index
      %c0_39 = arith.constant 0 : index
      %61 = vector.load %arg9[%c0_38, %c0_39] : memref<128x1xf32, #tpu.memory_space<vmem>>, vector<128x1xf32>
      tpu.vector_store %arg9[%c0_38, %c0_39], %60 {strides = array<i32>} : memref<128x1xf32, #tpu.memory_space<vmem>>, vector<128x1xf32>,
      %cst_40 = arith.constant 0.000000e+00 : f32
      %62 = vector.broadcast %cst_40 : f32 to vector<128x1xf32>
      %c0_41 = arith.constant 0 : index
      %c0_42 = arith.constant 0 : index
      %63 = vector.load %arg10[%c0_41, %c0_42] : memref<128x1xf32, #tpu.memory_space<vmem>>, vector<128x1xf32>
      tpu.vector_store %arg10[%c0_41, %c0_42], %62 {strides = array<i32>} : memref<128x1xf32, #tpu.memory_space<vmem>>, vector<128x1xf32>,
      %cst_43 = arith.constant 0.000000e+00 : f32
      %64 = vector.broadcast %cst_43 : f32 to vector<128x1xf32>
      %c0_44 = arith.constant 0 : index
      %c0_45 = arith.constant 0 : index
      %65 = vector.load %arg11[%c0_44, %c0_45] : memref<128x1xf32, #tpu.memory_space<vmem>>, vector<128x1xf32>
      tpu.vector_store %arg11[%c0_44, %c0_45], %64 {strides = array<i32>} : memref<128x1xf32, #tpu.memory_space<vmem>>, vector<128x1xf32>,
      %cst_46 = arith.constant 0.000000e+00 : f32
      %66 = vector.broadcast %cst_46 : f32 to vector<128x1xf32>
      %c0_47 = arith.constant 0 : index
      %c0_48 = arith.constant 0 : index
      %67 = vector.load %arg12[%c0_47, %c0_48] : memref<128x1xf32, #tpu.memory_space<vmem>>, vector<128x1xf32>
      tpu.vector_store %arg12[%c0_47, %c0_48], %66 {strides = array<i32>} : memref<128x1xf32, #tpu.memory_space<vmem>>, vector<128x1xf32>,
    } else {
    }
    %c0 = arith.constant 0 : index
    %c0_1 = arith.constant 0 : index
    %3 = vector.load %arg4[%c0, %c0_1] : memref<128x128xbf16, #tpu.memory_space<vmem>>, vector<128x128xbf16>
    %c0_2 = arith.constant 0 : index
    %c0_3 = arith.constant 0 : index
    %4 = vector.load %arg5[%c0_2, %c0_3] : memref<128x128xbf16, #tpu.memory_space<vmem>>, vector<128x128xbf16>
    %cst = arith.constant dense<0.000000e+00> : vector<128x128xf32>
    %5 = tpu.matmul %3, %4, %cst {dimension_numbers = #tpu.dot_dimension_numbers<[1], [1], [0], [0], [0, 0, 1, 0], [], []>} : vector<128x128xbf16>, vector<128x128xbf16>, vector<128x128xf32> -> vector<128x128xf32>
    %c0_4 = arith.constant 0 : index
    %c0_5 = arith.constant 0 : index
    %6 = vector.load %arg6[%c0_4, %c0_5] : memref<128x128xbf16, #tpu.memory_space<vmem>>, vector<128x128xbf16>
    %c0_6 = arith.constant 0 : index
    %c0_7 = arith.constant 0 : index
    %7 = vector.load %arg7[%c0_6, %c0_7] : memref<128x128xbf16, #tpu.memory_space<vmem>>, vector<128x128xbf16>
    %cst_8 = arith.constant dense<0.000000e+00> : vector<128x128xf32>
    %8 = tpu.matmul %6, %7, %cst_8 {dimension_numbers = #tpu.dot_dimension_numbers<[1], [1], [0], [0], [0, 0, 1, 0], [], []>} : vector<128x128xbf16>, vector<128x128xbf16>, vector<128x128xf32> -> vector<128x128xf32>
    %c128_i32 = arith.constant 128 : i32
    %9 = arith.muli %arg0, %c128_i32 : i32
    %10 = tpu.iota {dimensions = array<i32: 0>} : vector<128x1xi32>
    %11 = vector.broadcast %9 : i32 to vector<128x1xi32>
    %12 = arith.addi %11, %10 : vector<128x1xi32>
    %c128_i32_9 = arith.constant 128 : i32
    %13 = arith.muli %arg1, %c128_i32_9 : i32
    %14 = tpu.iota {dimensions = array<i32: 1>} : vector<1x128xi32>
    %15 = vector.broadcast %13 : i32 to vector<1x128xi32>
    %16 = arith.addi %15, %14 : vector<1x128xi32>
    %17 = vector.broadcast %12 : vector<128x1xi32> to vector<128x128xi32>
    %18 = vector.broadcast %16 : vector<1x128xi32> to vector<128x128xi32>
    %19 = arith.cmpi ne, %17, %18 : vector<128x128xi32>
    %cst_10 = arith.constant 0.000000e+00 : f32
    %20 = vector.broadcast %cst_10 : f32 to vector<128x128xf32>
    %21 = arith.select %19, %8, %20 : vector<128x128xi1>, vector<128x128xf32>
    %c0_11 = arith.constant 0 : index
    %c0_12 = arith.constant 0 : index
    %22 = vector.load %arg2[%c0_11, %c0_12] : memref<128x1xi32, #tpu.memory_space<vmem>>, vector<128x1xi32>
    %c0_13 = arith.constant 0 : index
    %c0_14 = arith.constant 0 : index
    %23 = vector.load %arg3[%c0_13, %c0_14] : memref<1x128xi32, #tpu.memory_space<vmem>>, vector<1x128xi32>
    %24 = vector.broadcast %22 : vector<128x1xi32> to vector<128x128xi32>
    %25 = vector.broadcast %23 : vector<1x128xi32> to vector<128x128xi32>
    %26 = arith.cmpi eq, %24, %25 : vector<128x128xi32>
    %cst_15 = arith.constant 0.000000e+00 : f32
    %27 = vector.broadcast %cst_15 : f32 to vector<128x128xf32>
    %28 = arith.select %26, %21, %27 : vector<128x128xi1>, vector<128x128xf32>
    %c0_16 = arith.constant 0 : index
    %c0_17 = arith.constant 0 : index
    %29 = vector.load %arg9[%c0_16, %c0_17] : memref<128x1xf32, #tpu.memory_space<vmem>>, vector<128x1xf32>
    %cst_18 = arith.constant dense<0xFF800000> : vector<128xf32>
    %30 = vector.multi_reduction <maximumf>, %5, %cst_18 [1] : vector<128x128xf32> to vector<128xf32>
    %31 = vector.shape_cast %30 : vector<128xf32> to vector<128x1xf32>
    %32 = arith.maximumf %29, %31 : vector<128x1xf32>
    %33 = vector.broadcast %32 : vector<128x1xf32> to vector<128x128xf32>
    %34 = arith.subf %5, %33 : vector<128x128xf32>
    %35 = math.exp %34 : vector<128x128xf32>
    %36 = arith.subf %29, %32 : vector<128x1xf32>
    %37 = math.exp %36 : vector<128x1xf32>
    %c0_19 = arith.constant 0 : index
    %c0_20 = arith.constant 0 : index
    %38 = vector.load %arg10[%c0_19, %c0_20] : memref<128x1xf32, #tpu.memory_space<vmem>>, vector<128x1xf32>
    %39 = arith.mulf %37, %38 : vector<128x1xf32>
    %40 = arith.mulf %35, %21 : vector<128x128xf32>
    %cst_21 = arith.constant dense<0.000000e+00> : vector<128xf32>
    %41 = vector.multi_reduction <add>, %40, %cst_21 [1] : vector<128x128xf32> to vector<128xf32>
    %42 = vector.shape_cast %41 : vector<128xf32> to vector<128x1xf32>
    %43 = arith.addf %39, %42 : vector<128x1xf32>
    %c0_22 = arith.constant 0 : index
    %c0_23 = arith.constant 0 : index
    %44 = vector.load %arg10[%c0_22, %c0_23] : memref<128x1xf32, #tpu.memory_space<vmem>>, vector<128x1xf32>
    tpu.vector_store %arg10[%c0_22, %c0_23], %43 {strides = array<i32>} : memref<128x1xf32, #tpu.memory_space<vmem>>, vector<128x1xf32>,
    %c0_24 = arith.constant 0 : index
    %c0_25 = arith.constant 0 : index
    %45 = vector.load %arg11[%c0_24, %c0_25] : memref<128x1xf32, #tpu.memory_space<vmem>>, vector<128x1xf32>
    %46 = arith.mulf %28, %5 : vector<128x128xf32>
    %cst_26 = arith.constant dense<0.000000e+00> : vector<128xf32>
    %47 = vector.multi_reduction <add>, %46, %cst_26 [1] : vector<128x128xf32> to vector<128xf32>
    %48 = vector.shape_cast %47 : vector<128xf32> to vector<128x1xf32>
    %49 = arith.addf %45, %48 : vector<128x1xf32>
    %c0_27 = arith.constant 0 : index
    %c0_28 = arith.constant 0 : index
    %50 = vector.load %arg11[%c0_27, %c0_28] : memref<128x1xf32, #tpu.memory_space<vmem>>, vector<128x1xf32>
    tpu.vector_store %arg11[%c0_27, %c0_28], %49 {strides = array<i32>} : memref<128x1xf32, #tpu.memory_space<vmem>>, vector<128x1xf32>,
    %c0_29 = arith.constant 0 : index
    %c0_30 = arith.constant 0 : index
    %51 = vector.load %arg12[%c0_29, %c0_30] : memref<128x1xf32, #tpu.memory_space<vmem>>, vector<128x1xf32>
    %cst_31 = arith.constant dense<0.000000e+00> : vector<128xf32>
    %52 = vector.multi_reduction <add>, %28, %cst_31 [1] : vector<128x128xf32> to vector<128xf32>
    %53 = vector.shape_cast %52 : vector<128xf32> to vector<128x1xf32>
    %54 = arith.addf %51, %53 : vector<128x1xf32>
    %c0_32 = arith.constant 0 : index
    %c0_33 = arith.constant 0 : index
    %55 = vector.load %arg12[%c0_32, %c0_33] : memref<128x1xf32, #tpu.memory_space<vmem>>, vector<128x1xf32>
    tpu.vector_store %arg12[%c0_32, %c0_33], %54 {strides = array<i32>} : memref<128x1xf32, #tpu.memory_space<vmem>>, vector<128x1xf32>,
    %c0_34 = arith.constant 0 : index
    %c0_35 = arith.constant 0 : index
    %56 = vector.load %arg9[%c0_34, %c0_35] : memref<128x1xf32, #tpu.memory_space<vmem>>, vector<128x1xf32>
    tpu.vector_store %arg9[%c0_34, %c0_35], %32 {strides = array<i32>} : memref<128x1xf32, #tpu.memory_space<vmem>>, vector<128x1xf32>,
    %c1_i32 = arith.constant 1 : i32
    %57 = arith.cmpi eq, %arg1, %c1_i32 : i32
    %58 = arith.extui %57 : i1 to i32
    %c0_i32_36 = arith.constant 0 : i32
    %59 = arith.cmpi ne, %58, %c0_i32_36 : i32
    scf.if %59 {
      %c0_37 = arith.constant 0 : index
      %c0_38 = arith.constant 0 : index
      %60 = vector.load %arg9[%c0_37, %c0_38] : memref<128x1xf32, #tpu.memory_space<vmem>>, vector<128x1xf32>
      %c0_39 = arith.constant 0 : index
      %c0_40 = arith.constant 0 : index
      %61 = vector.load %arg10[%c0_39, %c0_40] : memref<128x1xf32, #tpu.memory_space<vmem>>, vector<128x1xf32>
      %62 = math.log %61 : vector<128x1xf32>
      %63 = arith.addf %60, %62 : vector<128x1xf32>
      %c0_41 = arith.constant 0 : index
      %c0_42 = arith.constant 0 : index
      %64 = vector.load %arg11[%c0_41, %c0_42] : memref<128x1xf32, #tpu.memory_space<vmem>>, vector<128x1xf32>
      %c0_43 = arith.constant 0 : index
      %c0_44 = arith.constant 0 : index
      %65 = vector.load %arg12[%c0_43, %c0_44] : memref<128x1xf32, #tpu.memory_space<vmem>>, vector<128x1xf32>
      %66 = arith.mulf %65, %63 : vector<128x1xf32>
      %67 = arith.subf %64, %66 : vector<128x1xf32>
      %c0_45 = arith.constant 0 : index
      %c0_46 = arith.constant 0 : index
      %68 = vector.load %arg8[%c0_45, %c0_46] : memref<128x1xf32, #tpu.memory_space<vmem>>, vector<128x1xf32>
      tpu.vector_store %arg8[%c0_45, %c0_46], %67 {strides = array<i32>} : memref<128x1xf32, #tpu.memory_space<vmem>>, vector<128x1xf32>,
    } else {
    }
    return
  }
  func.func @transform_0(%arg0: i32, %arg1: i32) -> (i32, i32) {
    %c0_i32 = arith.constant 0 : i32
    %c0_i32_0 = arith.constant 0 : i32
    return %arg0, %c0_i32 : i32, i32
  }
  func.func @transform_1(%arg0: i32, %arg1: i32) -> (i32, i32) {
    %c0_i32 = arith.constant 0 : i32
    %c0_i32_0 = arith.constant 0 : i32
    return %c0_i32, %arg1 : i32, i32
  }
  func.func @transform_2(%arg0: i32, %arg1: i32) -> (i32, i32) {
    %c0_i32 = arith.constant 0 : i32
    %c0_i32_0 = arith.constant 0 : i32
    return %arg0, %c0_i32 : i32, i32
  }
  func.func @transform_3(%arg0: i32, %arg1: i32) -> (i32, i32) {
    %c0_i32 = arith.constant 0 : i32
    %c0_i32_0 = arith.constant 0 : i32
    return %arg1, %c0_i32 : i32, i32
  }
  func.func @transform_4(%arg0: i32, %arg1: i32) -> (i32, i32) {
    %c0_i32 = arith.constant 0 : i32
    %c0_i32_0 = arith.constant 0 : i32
    return %arg0, %c0_i32 : i32, i32
  }
  func.func @transform_5(%arg0: i32, %arg1: i32) -> (i32, i32) {
    %c0_i32 = arith.constant 0 : i32
    %c0_i32_0 = arith.constant 0 : i32
    return %arg1, %c0_i32 : i32, i32
  }
  func.func @transform_6(%arg0: i32, %arg1: i32) -> (i32, i32) {
    %c0_i32 = arith.constant 0 : i32
    %c0_i32_0 = arith.constant 0 : i32
    return %arg0, %c0_i32 : i32, i32
  }
}

</mosaic_0001>

<bundles_post_ra>
// kernel: tpu_custom_call.1
= control target key start
LH: loop header
LB: loop body
LE: loop exit
PB: predicated region body
PF: predicated region fallthrough
CT: control target
= control target key end

     0   :  { %s3600_s0 = inlined_call_operand.vmem [shape: s32[256,1], index: 0, kind: input, shape index: {}]   ;;  %s3601_s1 = inlined_call_operand.vmem [shape: s32[1,256], index: 1, kind: input, shape index: {}]   ;;  %s3602_s2 = inlined_call_operand.vmem [shape: bf16[256,128], index: 2, kind: input, shape index: {}]   ;;  %s3603_s3 = inlined_call_operand.vmem [shape: bf16[256,128], index: 3, kind: input, shape index: {}]   ;;  %s3604_s4 = inlined_call_operand.hbm [shape: bf16[256,128], index: 4, kind: input, shape index: {}]   ;;  %s3605_s5 = inlined_call_operand.hbm [shape: bf16[256,128], index: 5, kind: input, shape index: {}]   ;;  %s3606_s6 = inlined_call_operand.vmem [shape: f32[256,1], index: 6, kind: output, shape index: {}]  }
   0x1   :  { %3642 = sst [smem:[#allocation42_spill]] %s3603_s3 }
   0x2   :  { %3643 = sst [smem:[#allocation43_spill]] %s3604_s4 }
   0x3   :  { %3644 = sst [smem:[#allocation44_spill]] %s3605_s5 }
   0x4   :  { %3645 = sst [smem:[#allocation45_spill]] %s3606_s6 }
   0x5   :  { %11 = vsyncpa [#allocation7], 0 }
   0x6   :  { %13 = vsyncpa [#allocation7 + $0x1], 0 }
   0x7   :  { %14 = vsyncpa [#allocation9], 0 }
   0x8   :  { %16 = vsyncpa [#allocation9 + $0x1], 0  ;;  %s2547_s21 = smov 0   ;;  %s2549_s22 = smov 0  }
   0x9   :  { %s2551_s23 = smov 0   ;;  %s2553_s24 = smov 0  }
   0xa   :  { %s2555_s25 = smov 0   ;;  %s2557_s26 = smov 0  }
   0xb   :  { %s2559_s27 = smov 0   ;;  %s2561_s28 = smov 0  }
   0xc   :  { %s2563_s29 = smov 0   ;;  %s2565_s30 = smov 0  }
   0xd   :  { %s2567_s7 = smov 0  }
   0xe LB: > { %3646 = sst [smem:[#allocation12_spill]] %s2483_s26  ;;  %s1956_s8 = sadd.s32 4294967295, %s2503_s7   ;;  %s2503_s7 = sphi %s2567_s7, %s22_s7   ;;  %s2499_s30 = sphi %s2565_s30, %s3740_s30   ;;  %s2495_s29 = sphi %s2563_s29, %s3739_s29   ;;  %s2491_s28 = sphi %s2561_s28, %s3738_s28   ;;  %s2487_s27 = sphi %s2559_s27, %s3746_s27   ;;  %s2483_s26 = sphi %s2557_s26, %s3736_s26   ;;  %s2479_s25 = sphi %s2555_s25, %s3745_s25   ;;  %s2475_s24 = sphi %s2553_s24, %s3744_s24   ;;  %s2471_s23 = sphi %s2551_s23, %s3743_s23   ;;  %s2467_s22 = sphi %s2549_s22, %s3742_s22   ;;  %s2463_s21 = sphi %s2547_s21, %s3741_s21  }
   0xf   : > { %3647 = sst [smem:[#allocation13_spill]] %s2495_s29  ;;  %s34_s9 = sadd.s32 1, %s2499_s30 }
  0x10   : > { %3648 = sst [smem:[#allocation14_spill]] %s2499_s30  ;;  %p152_p0 = scmp.ne.s32.totalorder %s2483_s26, %s2479_s25 }
  0x11   : > { %p3608_p1 = scmp.eq.s32.totalorder %s2503_s7, 0  ;;  %p158_p2 = scmp.ne.s32.totalorder %s2479_s25, %s2475_s24 }
  0x12   : > { %p2606_p3 = scmp.eq.s32.totalorder %s1956_s8, 0  ;;  %p3607_p5 = scmp.lt.s32.totalorder %s2503_s7, 4 }
  0x13   : > { %p154_p4 = por %p3608_p1, %p152_p0  ;;  %s267_s12 = sand.u32 1, %s2483_s26  }
  0x14   : > { %p2615_p6 = por %p2606_p3, %p158_p2  ;;  %s1960_s13 = sshll.u32 %s267_s12, 6 }
  0x15   : > { %s2016_s14 = sshll.u32 %s2499_s30, 10  ;;  %s3651_s4 = sld [smem:[#allocation43_spill]] }
  0x16   : > { %s3650_s11 = scalar_select %p2615_p6, 1, 0 }
  0x17   : > { %s271_s18 = scalar_lea.vmem [#allocation6], %s1960_s13  ;;  %p2630_p7 = pnand %p3607_p5, %p154_p4 }
  0x18   : > { %s278_s19 = sshll.u32 %s271_s18, 4  ;;  %s2635_s24 = scalar_lea.sflag [#allocation7], %s267_s12  ;;  %s2626_s19 = int_to_ptr.vmem [resolvable:$true] %s278_s19 }
  0x19   : > { %p2351_p10 = pneg %p2630_p7 }
  0x1b   : > { %s2624_s17 = scalar_lea.hbm %s3651_s4, %s2016_s14  ;;  %s2354_s15 = scalar_lea.hbm %s3651_s4, 2048 }
  0x1c   : > { %s2349_s8 = scalar_lea.hbm %s2624_s17, 1024  ;;  %p2355_p13 = scmp.lt.u32.totalorder %s2624_s17, %s3651_s4 }
  0x1d   : > { %p2350_p9 = scmp.ne.s32.totalorder %s2624_s17, %s2349_s8  ;;  %p2356_p0 = scmp.lt.u32.totalorder %s2354_s15, %s2349_s8 }
  0x1e   : > { %p2358_p4 = scmp.lt.u32.totalorder %s2349_s8, %s2624_s17 }
  0x1f   : > { %p2352_p11 = pnand %p2351_p10, %p2350_p9  ;;  %p2357_p2 = por %p2356_p0, %p2355_p13 }
  0x21   : > { %p2353_p12 = pneg %p2352_p11  ;;  %p2359_p5 = por %p2358_p4, %p2357_p2 }
  0x23   : > { %p2360_p1 = pnand %p2359_p5, %p2353_p12 }
  0x25   : > { %2363 = shalt.err (!%p2360_p1)
}
  0x26   : > { %s2364_s12 = scalar_lea.vmem %s2626_s19, 1024  ;;  %s2505_s13 = smov [#allocation6]  }
  0x27   : > { %p2365_p9 = scmp.ne.s32.totalorder %s2626_s19, %s2364_s12  ;;  %s2369_s14 = sshll.u32 %s2505_s13, 4  ;;  %s2370_s14 = int_to_ptr.vmem [resolvable:$false] %s2369_s14 }
  0x28   : > { %s2371_s16 = scalar_lea.vmem %s2370_s14, 2048  ;;  %p2372_p6 = scmp.lt.s32.totalorder %s2626_s19, %s2370_s14 }
  0x29   : > { %p2367_p11 = pnand %p2365_p9, %p2351_p10  ;;  %p2373_p13 = scmp.lt.s32.totalorder %s2371_s16, %s2364_s12 }
  0x2b   : > { %p2368_p8 = pneg %p2367_p11  ;;  %p2374_p0 = por %p2373_p13, %p2372_p6 }
  0x2d   : > { %p2375_p2 = pnand %p2374_p0, %p2368_p8 }
  0x2f   : > { %2378 = shalt.err (!%p2375_p2)
}
  0x30   : > { %s3610_s8 = smov 64   ;;  %s3611_s15 = smov 4  }
  0x31   : > { %2121 = dma.hbm_to_vmem [thread:$0]  (!%p2630_p7), %s2624_s17, 1024, %s2626_s19, %s2635_s24, %s3610_s8, %s3610_s8, %s3611_s15  }
  0x32   : > { %p307_p1 = scmp.lt.s32.totalorder %s2503_s7, 5  ;;  %p3653_p5 = scmp.ge.s32.totalorder %s2503_s7, 1 }
  0x33   : > { %s145_s12 = sadd.s32 1, %s2483_s26  ;;  %s31_s13 = sadd.s32 1, %s2495_s29 }
  0x34   : > { %p2669_p6 = pnand %p3653_p5, %p307_p1  ;;  %p32_p8 = scmp.ge.s32.totalorder %s31_s13, 2 }
  0x35   : > { %s171_s14 = sadd.s32 1, %s2471_s23  ;;  %p178_p10 = scmp.ne.s32.totalorder %s2471_s23, %s2467_s22 }
  0x36   : > { %p184_p12 = scmp.ne.s32.totalorder %s2467_s22, %s2463_s21  ;;  %s3748_s13 = smov (%p32_p8, %s31_s13), 0 }
  0x37   : > { %3655 = sst [smem:[#allocation15_spill]] %s3748_s13  ;;  %s3750_s9 = smov (!%p32_p8, %s34_s9), %s2499_s30 }
  0x38   : > { %s168_s17 = ssub.s32 %s2495_s29, %s3748_s13  ;;  %s288_s19 = sand.u32 1, %s2471_s23  }
  0x39   : > { %p36_p7 = scmp.ge.s32.totalorder %s3750_s9, 2  ;;  %p169_p4 = scmp.eq.s32.totalorder %s168_s17, 0 }
  0x3a   : > { %p3656_p9 = scmp.eq.s32.totalorder %s2503_s7, 0  ;;  %p2696_p13 = por %p184_p12, %p2606_p3 }
  0x3b   : > { %s3752_s9 = smov (%p36_p7, %s3750_s9), 0  ;;  %s1963_s8 = sshll.u32 %s288_s19, 6 }
  0x3c   : > { %p2690_p11 = por %p178_p10, %p3656_p9  ;;  %3659 = sst [smem:[#allocation16_spill]] %s3752_s9 }
  0x3d   : > { %s3658_s21 = scalar_select %p2696_p13, 1, 0 }
  0x3e   : > { %s2703_s24 = scalar_select %p169_p4, %s2471_s23, %s171_s14  }
  0x3f   : > { %s142_s16 = ssub.s32 %s2499_s30, %s3752_s9  ;;  %s2017_s17 = sshll.u32 %s2495_s29, 10 }
  0x40   : > { %p143_p0 = scmp.eq.s32.totalorder %s142_s16, 0  ;;  %s292_s15 = scalar_lea.vmem [#allocation8], %s1963_s8 }
  0x41   : > { %s299_s4 = sshll.u32 %s292_s15, 4  ;;  %s3661_s5 = sld [smem:[#allocation44_spill]]  ;;  %s2716_s4 = int_to_ptr.vmem [resolvable:$true] %s299_s4 }
  0x42   : > { %s2709_s13 = scalar_select %p143_p0, %s2483_s26, %s145_s12  }
  0x43   : > { %p3662_p3 = scmp.lt.s32.totalorder %s2503_s7, 4  ;;  %s2726_s8 = scalar_lea.sflag [#allocation9], %s288_s19 }
  0x44   : > { %3660 = sst [smem:[#allocation17_spill]] %s2709_s13 }
  0x45   : > { %p2722_p2 = pnand %p3662_p3, %p2690_p11 }
  0x47   : > { %s2714_s6 = scalar_lea.hbm %s3661_s5, %s2017_s17  ;;  %p2381_p5 = pneg %p2722_p2 }
  0x48   : > { %s2379_s15 = scalar_lea.hbm %s2714_s6, 1024  ;;  %s2384_s20 = scalar_lea.hbm %s3661_s5, 2048 }
  0x49   : > { %p2380_p1 = scmp.ne.s32.totalorder %s2714_s6, %s2379_s15  ;;  %p2385_p12 = scmp.lt.u32.totalorder %s2714_s6, %s3661_s5 }
  0x4a   : > { %p2386_p7 = scmp.lt.u32.totalorder %s2384_s20, %s2379_s15  ;;  %p2388_p9 = scmp.lt.u32.totalorder %s2379_s15, %s2714_s6 }
  0x4b   : > { %p2382_p8 = pnand %p2381_p5, %p2380_p1 }
  0x4c   : > { %p2387_p4 = por %p2386_p7, %p2385_p12 }
  0x4d   : > { %p2383_p10 = pneg %p2382_p8 }
  0x4e   : > { %p2389_p11 = por %p2388_p9, %p2387_p4 }
  0x50   : > { %p2390_p0 = pnand %p2389_p11, %p2383_p10 }
  0x52   : > { %2393 = shalt.err (!%p2390_p0)
}
  0x53   : > { %s2394_s19 = scalar_lea.vmem %s2716_s4, 1024  ;;  %s2508_s10 = smov [#allocation8]  }
  0x54   : > { %p2395_p3 = scmp.ne.s32.totalorder %s2716_s4, %s2394_s19  ;;  %s2399_s3 = sshll.u32 %s2508_s10, 4  ;;  %s2400_s3 = int_to_ptr.vmem [resolvable:$false] %s2399_s3 }
  0x55   : > { %s2401_s12 = scalar_lea.vmem %s2400_s3, 2048  ;;  %p2402_p13 = scmp.lt.s32.totalorder %s2716_s4, %s2400_s3 }
  0x56   : > { %p2397_p1 = pnand %p2395_p3, %p2381_p5  ;;  %p2403_p12 = scmp.lt.s32.totalorder %s2401_s12, %s2394_s19 }
  0x58   : > { %p2398_p8 = pneg %p2397_p1  ;;  %p2404_p7 = por %p2403_p12, %p2402_p13 }
  0x5a   : > { %p2405_p4 = pnand %p2404_p7, %p2398_p8 }
  0x5c   : > { %2408 = shalt.err (!%p2405_p4)
}
  0x5d   : > { %s3664_s15 = smov 4   ;;  %s3665_s20 = smov 64  }
  0x5e   : > { %2124 = dma.hbm_to_vmem [thread:$0]  (!%p2722_p2), %s2714_s6, 1024, %s2716_s4, %s2726_s8, %s3665_s20, %s3665_s20, %s3664_s15  }
  0x5f   : > { %311 = sbr.rel (%p2669_p6) target bundleno = 945 (0x3b1), region = 44 }
  0x66   : > { %s313_s16 = sand.u32 1, %s2479_s25   ;;  %p3666_p13 = scmp.ne.s32.totalorder %s3650_s11, 0 }
  0x67   : > { %s1967_s17 = sshll.u32 %s313_s16, 6  ;;  %s314_s19 = scalar_lea.sflag [#allocation7], %s313_s16 }
  0x68   : > { %s2760_s10 = scalar_lea.vmem [#allocation6], %s1967_s17 }
  0x69   : > { %2454 = dma.done.wait (%p3666_p13), %s314_s19, 1024  }
  0x6a   : > { %2456 = vsyncadd (%p3666_p13), %s314_s19, 4294966272  ;;  %s322_s14 = sand.u32 1, %s2467_s22   ;;  %p3667_p6 = scmp.ne.s32.totalorder %s3658_s21, 0 }
  0x6b   : > { %s1968_s3 = sshll.u32 %s322_s14, 6  ;;  %s323_s4 = scalar_lea.sflag [#allocation9], %s322_s14 }
  0x6c   : > { %s2767_s6 = scalar_lea.vmem [#allocation8], %s1968_s3 }
  0x6d   : > { %2458 = dma.done.wait (%p3667_p6), %s323_s4, 1024  }
  0x6e   : > { %2460 = vsyncadd (%p3667_p6), %s323_s4, 4294966272  ;;  %s1969_s18 = sshll.u32 %s2491_s28, 4  ;;  %p384_p2 = scmp.lt.s32.totalorder %s2487_s27, 1 }
  0x6f   : > { %p379_p5 = scmp.lt.s32.totalorder %s1969_s18, 31  ;;  %s1973_s11 = sshll.u32 %s2487_s27, 4 }
  0x70   : > { %s2777_s8 = scalar_select %p384_p2, %s2487_s27, 1 }
  0x71   : > { %s3754_s18 = smov (!%p379_p5, %s1969_s18), 31  ;;  %p394_p10 = scmp.lt.s32.totalorder %s1973_s11, 31 }
  0x72   : > { %s1970_s16 = sshll.u32 %s3754_s18, 3  ;;  %s1972_s21 = sshll.u32 %s3754_s18, 2 }
  0x73   : > { %s2786_s14 = scalar_lea.vmem %s3600_s0, %s1970_s16  ;;  %s2791_s5 = scalar_lea.vmem %s3602_s2, %s1972_s21 }
  0x74   : > { %s3756_s11 = smov (!%p394_p10, %s1973_s11), 31  ;;  %s3668_s29 = sld [smem:[#allocation45_spill]] }
  0x75   : > { %s1974_s12 = sshll.u32 %s3756_s11, 2  ;;  %s3669_s18 = sld [smem:[#allocation42_spill]] }
  0x76   : > { %p1977_p9 = scmp.ne.s32.totalorder %s2487_s27, 0 }
  0x77   : > { %vm412_vm0 = vcmask (!%p1977_p9), 7168   ;;  %v2509_v0 = vmov (!%p1977_p9), -inf   ;;  %v2510_v1 = vmov (!%p1977_p9), 0.0  }
  0x78   : > { %411 = sbr.rel (%p1977_p9) target bundleno = 152 (0x98), region = 56  ;;  %413 = vst.msk [vmem:[#allocation2] sm:$0xff] (!%p1977_p9), %vm412_vm0, %v2509_v0  ;;  %414 = vst.msk [vmem:[#allocation2 + $0x8] sm:$0xff] (!%p1977_p9), %vm412_vm0, %v2509_v0 }
  0x79   : > { %415 = vst.msk [vmem:[#allocation2 + $0x10] sm:$0xff] (!%p1977_p9), %vm412_vm0, %v2509_v0  ;;  %416 = vst.msk [vmem:[#allocation2 + $0x18] sm:$0xff] (!%p1977_p9), %vm412_vm0, %v2509_v0 }
  0x7a   : > { %s2796_s13 = scalar_lea.vmem %s3668_s29, %s1970_s16  ;;  %417 = vst.msk [vmem:[#allocation2 + $0x20] sm:$0xff] (!%p1977_p9), %vm412_vm0, %v2509_v0  ;;  %418 = vst.msk [vmem:[#allocation2 + $0x28] sm:$0xff] (!%p1977_p9), %vm412_vm0, %v2509_v0 }
  0x7b   : > { %s2801_s26 = scalar_lea.vmem %s3669_s18, %s1974_s12  ;;  %419 = vst.msk [vmem:[#allocation2 + $0x30] sm:$0xff] (!%p1977_p9), %vm412_vm0, %v2509_v0  ;;  %420 = vst.msk [vmem:[#allocation2 + $0x38] sm:$0xff] (!%p1977_p9), %vm412_vm0, %v2509_v0 }
  0x7c   : > { %421 = vst.msk [vmem:[#allocation2 + $0x40] sm:$0xff] (!%p1977_p9), %vm412_vm0, %v2509_v0  ;;  %422 = vst.msk [vmem:[#allocation2 + $0x48] sm:$0xff] (!%p1977_p9), %vm412_vm0, %v2509_v0 }
  0x7d   : > { %423 = vst.msk [vmem:[#allocation2 + $0x50] sm:$0xff] (!%p1977_p9), %vm412_vm0, %v2509_v0  ;;  %424 = vst.msk [vmem:[#allocation2 + $0x58] sm:$0xff] (!%p1977_p9), %vm412_vm0, %v2509_v0 }
  0x7e   : > { %425 = vst.msk [vmem:[#allocation2 + $0x60] sm:$0xff] (!%p1977_p9), %vm412_vm0, %v2509_v0  ;;  %426 = vst.msk [vmem:[#allocation2 + $0x68] sm:$0xff] (!%p1977_p9), %vm412_vm0, %v2509_v0 }
  0x7f   : > { %427 = vst.msk [vmem:[#allocation2 + $0x70] sm:$0xff] %vm412_vm0, %v2509_v0  ;;  %428 = vst.msk [vmem:[#allocation2 + $0x78] sm:$0xff] %vm412_vm0, %v2509_v0 }
  0x80   : > { %429 = vst.msk [vmem:[#allocation3] sm:$0xff] %vm412_vm0, %v2510_v1  ;;  %430 = vst.msk [vmem:[#allocation3 + $0x8] sm:$0xff] %vm412_vm0, %v2510_v1 }
  0x81   : > { %431 = vst.msk [vmem:[#allocation3 + $0x10] sm:$0xff] %vm412_vm0, %v2510_v1  ;;  %432 = vst.msk [vmem:[#allocation3 + $0x18] sm:$0xff] %vm412_vm0, %v2510_v1 }
  0x82   : > { %433 = vst.msk [vmem:[#allocation3 + $0x20] sm:$0xff] %vm412_vm0, %v2510_v1  ;;  %434 = vst.msk [vmem:[#allocation3 + $0x28] sm:$0xff] %vm412_vm0, %v2510_v1 }
  0x83   : > { %435 = vst.msk [vmem:[#allocation3 + $0x30] sm:$0xff] %vm412_vm0, %v2510_v1  ;;  %436 = vst.msk [vmem:[#allocation3 + $0x38] sm:$0xff] %vm412_vm0, %v2510_v1 }
  0x84   : > { %437 = vst.msk [vmem:[#allocation3 + $0x40] sm:$0xff] %vm412_vm0, %v2510_v1  ;;  %438 = vst.msk [vmem:[#allocation3 + $0x48] sm:$0xff] %vm412_vm0, %v2510_v1 }
  0x85   : > { %439 = vst.msk [vmem:[#allocation3 + $0x50] sm:$0xff] %vm412_vm0, %v2510_v1  ;;  %440 = vst.msk [vmem:[#allocation3 + $0x58] sm:$0xff] %vm412_vm0, %v2510_v1 }
  0x86   : > { %441 = vst.msk [vmem:[#allocation3 + $0x60] sm:$0xff] %vm412_vm0, %v2510_v1  ;;  %442 = vst.msk [vmem:[#allocation3 + $0x68] sm:$0xff] %vm412_vm0, %v2510_v1 }
  0x87   : > { %443 = vst.msk [vmem:[#allocation3 + $0x70] sm:$0xff] %vm412_vm0, %v2510_v1  ;;  %444 = vst.msk [vmem:[#allocation3 + $0x78] sm:$0xff] %vm412_vm0, %v2510_v1 }
  0x88   : > { %445 = vst.msk [vmem:[#allocation4] sm:$0xff] %vm412_vm0, %v2510_v1  ;;  %446 = vst.msk [vmem:[#allocation4 + $0x8] sm:$0xff] %vm412_vm0, %v2510_v1 }
  0x89   : > { %447 = vst.msk [vmem:[#allocation4 + $0x10] sm:$0xff] %vm412_vm0, %v2510_v1  ;;  %448 = vst.msk [vmem:[#allocation4 + $0x18] sm:$0xff] %vm412_vm0, %v2510_v1 }
  0x8a   : > { %449 = vst.msk [vmem:[#allocation4 + $0x20] sm:$0xff] %vm412_vm0, %v2510_v1  ;;  %450 = vst.msk [vmem:[#allocation4 + $0x28] sm:$0xff] %vm412_vm0, %v2510_v1 }
  0x8b   : > { %451 = vst.msk [vmem:[#allocation4 + $0x30] sm:$0xff] %vm412_vm0, %v2510_v1  ;;  %452 = vst.msk [vmem:[#allocation4 + $0x38] sm:$0xff] %vm412_vm0, %v2510_v1 }
  0x8c   : > { %453 = vst.msk [vmem:[#allocation4 + $0x40] sm:$0xff] %vm412_vm0, %v2510_v1  ;;  %454 = vst.msk [vmem:[#allocation4 + $0x48] sm:$0xff] %vm412_vm0, %v2510_v1 }
  0x8d   : > { %455 = vst.msk [vmem:[#allocation4 + $0x50] sm:$0xff] %vm412_vm0, %v2510_v1  ;;  %456 = vst.msk [vmem:[#allocation4 + $0x58] sm:$0xff] %vm412_vm0, %v2510_v1 }
  0x8e   : > { %457 = vst.msk [vmem:[#allocation4 + $0x60] sm:$0xff] %vm412_vm0, %v2510_v1  ;;  %458 = vst.msk [vmem:[#allocation4 + $0x68] sm:$0xff] %vm412_vm0, %v2510_v1 }
  0x8f   : > { %459 = vst.msk [vmem:[#allocation4 + $0x70] sm:$0xff] %vm412_vm0, %v2510_v1  ;;  %460 = vst.msk [vmem:[#allocation4 + $0x78] sm:$0xff] %vm412_vm0, %v2510_v1 }
  0x90   : > { %461 = vst.msk [vmem:[#allocation5] sm:$0xff] %vm412_vm0, %v2510_v1  ;;  %462 = vst.msk [vmem:[#allocation5 + $0x8] sm:$0xff] %vm412_vm0, %v2510_v1 }
  0x91   : > { %463 = vst.msk [vmem:[#allocation5 + $0x10] sm:$0xff] %vm412_vm0, %v2510_v1  ;;  %464 = vst.msk [vmem:[#allocation5 + $0x18] sm:$0xff] %vm412_vm0, %v2510_v1 }
  0x92   : > { %465 = vst.msk [vmem:[#allocation5 + $0x20] sm:$0xff] %vm412_vm0, %v2510_v1  ;;  %466 = vst.msk [vmem:[#allocation5 + $0x28] sm:$0xff] %vm412_vm0, %v2510_v1 }
  0x93   : > { %467 = vst.msk [vmem:[#allocation5 + $0x30] sm:$0xff] %vm412_vm0, %v2510_v1  ;;  %468 = vst.msk [vmem:[#allocation5 + $0x38] sm:$0xff] %vm412_vm0, %v2510_v1 }
  0x94   : > { %469 = vst.msk [vmem:[#allocation5 + $0x40] sm:$0xff] %vm412_vm0, %v2510_v1  ;;  %470 = vst.msk [vmem:[#allocation5 + $0x48] sm:$0xff] %vm412_vm0, %v2510_v1 }
  0x95   : > { %471 = vst.msk [vmem:[#allocation5 + $0x50] sm:$0xff] %vm412_vm0, %v2510_v1  ;;  %472 = vst.msk [vmem:[#allocation5 + $0x58] sm:$0xff] %vm412_vm0, %v2510_v1 }
  0x96   : > { %473 = vst.msk [vmem:[#allocation5 + $0x60] sm:$0xff] %vm412_vm0, %v2510_v1  ;;  %474 = vst.msk [vmem:[#allocation5 + $0x68] sm:$0xff] %vm412_vm0, %v2510_v1 }
  0x97   : > { %475 = vst.msk [vmem:[#allocation5 + $0x70] sm:$0xff] %vm412_vm0, %v2510_v1  ;;  %476 = vst.msk [vmem:[#allocation5 + $0x78] sm:$0xff] %vm412_vm0, %v2510_v1 }
  0x98 PF: > { %v2221_v2 = vld [vmem:[%s2801_s26] sm:$0xff]   ;;  %v2511_v4 = vmov 0   ;;  %v2223_v5 = vld [vmem:[%s2801_s26 + $0x8] sm:$0xff]   ;;  %v2225_v7 = vld [vmem:[%s2801_s26 + $0x10] sm:$0xff]   ;;  %v928_v50 = vlaneseq  ;;  %s2010_s29 = sshll.u32 %s2491_s28, 7  ;;  %s3670_s30 = scalar_lea.vmem %s3601_s1, %s2777_s8 }
  0x99   : > { %v2222_v3 = vld [vmem:[%s2767_s6] sm:$0xff]   ;;  %2220 = vset.pattern.permute.xlu1 %v2511_v4  ;;  %2219 = vset.pattern.permute.xlu0 %v2511_v4  ;;  %v2224_v6 = vld [vmem:[%s2767_s6 + $0x8] sm:$0xff]   ;;  %v2226_v8 = vld [vmem:[%s2767_s6 + $0x10] sm:$0xff]   ;;  %v2920_v55 = vstv %s2010_s29  ;;  %p2013_p11 = scmp.ne.s32.totalorder %s2487_s27, 1 }
  0x9a   : > { %2050 = vmatprep.subr.bf16.mxu0 %v2221_v2  ;;  %2082 = vmatprep.subr.bf16.mxu1 %v2222_v3  ;;  %v2227_v9 = vld [vmem:[%s2801_s26 + $0x18] sm:$0xff]   ;;  %v2237_v11 = vld [vmem:[%s2791_s5] sm:$0xff]   ;;  %v2231_v15 = vld [vmem:[%s2801_s26 + $0x28] sm:$0xff]   ;;  %v2917_v51 = vshrl.u32 %v928_v50, 7  ;;  %v964_v52 = vand.u32 127, %v928_v50 }
  0x9b   : > { %2051 = vmatpush3.bf16.xpose.msra.mxu0 %v2221_v2  ;;  %2083 = vmatpush3.bf16.xpose.msra.mxu1 %v2222_v3  ;;  %v2228_v10 = vld [vmem:[%s2767_s6 + $0x18] sm:$0xff]   ;;  %v2238_v12 = vld [vmem:[%s2760_s10] sm:$0xff]   ;;  %v1001_v16 = vld [vmem:[%s2786_s14 + $0x10] sm:$0xff] }
  0x9c   : > { %2052 = vmatprep.subr.bf16.mxu0 %v2223_v5  ;;  %2084 = vmatprep.subr.bf16.mxu1 %v2224_v6  ;;  %v2229_v13 = vld [vmem:[%s2801_s26 + $0x20] sm:$0xff]   ;;  %v2232_v18 = vld [vmem:[%s2767_s6 + $0x28] sm:$0xff]   ;;  %v1002_v19 = vld [vmem:[%s2786_s14 + $0x18] sm:$0xff]  ;;  %v939_v54 = vadd.s32 80, %v2917_v51  ;;  %v940_v58 = vadd.s32 88, %v2917_v51  ;;  %v943_v60 = vadd.s32 112, %v2917_v51 }
  0x9d   : > { %2066 = vmatprep.mubr.bf16.mxu0 %v2237_v11  ;;  %2098 = vmatprep.mubr.bf16.mxu1 %v2238_v12  ;;  %v2230_v14 = vld [vmem:[%s2767_s6 + $0x20] sm:$0xff]   ;;  %v1000_v20 = vld [vmem:[%s2786_s14 + $0x8] sm:$0xff]  ;;  %v2233_v23 = vld [vmem:[%s2801_s26 + $0x30] sm:$0xff]   ;;  %v941_v61 = vadd.s32 96, %v2917_v51  ;;  %v942_v0 = vadd.s32 104, %v2917_v51  ;;  %v944_v2 = vadd.s32 120, %v2917_v51 }
  0x9e   : > { %v999_v17 = vld [vmem:[%s2786_s14] sm:$0xff]  ;;  %1023 = vperm.xlu1 %2220, %v1001_v16   ;;  %v1004_v21 = vld [vmem:[%s2786_s14 + $0x28] sm:$0xff]  ;;  %v2234_v24 = vld [vmem:[%s2767_s6 + $0x30] sm:$0xff]   ;;  %v2925_v57 = vadd.s32 %v2920_v55, %v939_v54  ;;  %v2931_v59 = vadd.s32 %v2920_v55, %v940_v58  ;;  %v2938_v62 = vadd.s32 %v2920_v55, %v943_v60  ;;  %v932_v11 = vadd.s32 24, %v2917_v51 }
  0x9f   : > { %1017 = vperm.xlu0 %2219, %v999_v17   ;;  %v1003_v22 = vld [vmem:[%s2786_s14 + $0x20] sm:$0xff]  ;;  %v1006_v25 = vld [vmem:[%s2786_s14 + $0x38] sm:$0xff]  ;;  %v1005_v26 = vld [vmem:[%s2786_s14 + $0x30] sm:$0xff]  ;;  %v2941_v63 = vadd.s32 %v2920_v55, %v941_v61  ;;  %v2949_v1 = vadd.s32 %v2920_v55, %v942_v0  ;;  %v2955_v3 = vadd.s32 %v2920_v55, %v944_v2  ;;  %v930_v16 = vadd.s32 8, %v2917_v51 }
  0xa0   : > { %v1008_v27 = vld [vmem:[%s2786_s14 + $0x48] sm:$0xff]  ;;  %v1007_v28 = vld [vmem:[%s2786_s14 + $0x40] sm:$0xff]  ;;  %v2235_v29 = vld [vmem:[%s2801_s26 + $0x38] sm:$0xff]   ;;  %s2011_s26 = sshll.u32 %s2487_s27, 7  ;;  %v934_v60 = vadd.s32 40, %v2917_v51 }
  0xa1   : > { %v2236_v30 = vld [vmem:[%s2767_s6 + $0x38] sm:$0xff]   ;;  %v1009_v32 = vld [vmem:[%s2786_s14 + $0x50] sm:$0xff]  ;;  %v1012_v33 = vld [vmem:[%s2786_s14 + $0x68] sm:$0xff]  ;;  %v965_v53 = vstv %s2011_s26 }
  0xa2   : > { %1026 = vperm.xlu1 %2220, %v1002_v19   ;;  %v1010_v31 = vld [vmem:[%s2786_s14 + $0x58] sm:$0xff]  ;;  %v1011_v34 = vld [vmem:[%s2786_s14 + $0x60] sm:$0xff]  ;;  %v1013_v35 = vld [vmem:[%s2786_s14 + $0x70] sm:$0xff]  ;;  %v2922_v56 = vadd.s32 %v965_v53, %v964_v52 }
  0xa3   : > { %2053 = vmatpush3.bf16.xpose.msra.mxu0 %v2223_v5  ;;  %2085 = vmatpush3.bf16.xpose.msra.mxu1 %v2224_v6  ;;  %v2239_v36 = vld [vmem:[%s2791_s5 + $0x8] sm:$0xff]   ;;  %v2243_v38 = vld [vmem:[%s2791_s5 + $0x10] sm:$0xff]   ;;  %v2244_v40 = vld [vmem:[%s2791_s5 + $0x18] sm:$0xff]  }
  0xa4   : > { %2054 = vmatprep.subr.bf16.mxu0 %v2225_v7  ;;  %2086 = vmatprep.subr.bf16.mxu1 %v2226_v8  ;;  %v2240_v37 = vld [vmem:[%s2760_s10 + $0x8] sm:$0xff]   ;;  %v2241_v39 = vld [vmem:[%s2760_s10 + $0x10] sm:$0xff]   ;;  %v2242_v41 = vld [vmem:[%s2760_s10 + $0x18] sm:$0xff]   ;;  %vm977_vm1 = vcmp.ne.s32.totalorder %v2925_v57, %v2922_v56  ;;  %vm978_vm2 = vcmp.ne.s32.totalorder %v2931_v59, %v2922_v56  ;;  %vm981_vm3 = vcmp.ne.s32.totalorder %v2938_v62, %v2922_v56 }
  0xa5   : > { %1020 = vperm.xlu0 %2219, %v1000_v20   ;;  %v2247_v42 = vld [vmem:[%s2791_s5 + $0x20] sm:$0xff]   ;;  %v2248_v44 = vld [vmem:[%s2791_s5 + $0x28] sm:$0xff]   ;;  %v2251_v46 = vld [vmem:[%s2791_s5 + $0x30] sm:$0xff]   ;;  %vm979_vm4 = vcmp.ne.s32.totalorder %v2941_v63, %v2922_v56  ;;  %vm980_vm5 = vcmp.ne.s32.totalorder %v2949_v1, %v2922_v56  ;;  %vm982_vm6 = vcmp.ne.s32.totalorder %v2955_v3, %v2922_v56 }
  0xa6   : > { %1032 = vperm.xlu1 %2220, %v1004_v21   ;;  %v2245_v43 = vld [vmem:[%s2760_s10 + $0x20] sm:$0xff]   ;;  %v2246_v45 = vld [vmem:[%s2760_s10 + $0x28] sm:$0xff]   ;;  %v2249_v47 = vld [vmem:[%s2760_s10 + $0x30] sm:$0xff]  }
  0xa7   : > { %v2252_v48 = vld [vmem:[%s2791_s5 + $0x38] sm:$0xff]  }
  0xa8   : > { %v2250_v49 = vld [vmem:[%s2760_s10 + $0x38] sm:$0xff]  }
  0xa9   : > { %1029 = vperm.xlu0 %2219, %v1003_v22  }
  0xaa   : > { %1038 = vperm.xlu1 %2220, %v1006_v25   ;;  %v947_v25 = vadd.s32 %v2920_v55, %v930_v16 }
  0xab   : > { %2055 = vmatpush3.bf16.xpose.msra.mxu0 %v2225_v7  ;;  %2087 = vmatpush3.bf16.xpose.msra.mxu1 %v2226_v8  ;;  %v931_v8 = vadd.s32 16, %v2917_v51 }
  0xac   : > { %2056 = vmatprep.subr.bf16.mxu0 %v2227_v9  ;;  %2088 = vmatprep.subr.bf16.mxu1 %v2228_v10  ;;  %vm968_vm13 = vcmp.ne.s32.totalorder %v947_v25, %v2922_v56 }
  0xad   : > { %1035 = vperm.xlu0 %2219, %v1005_v26   ;;  %v948_v12 = vadd.s32 %v2920_v55, %v931_v8  ;;  %v951_v8 = vadd.s32 %v2920_v55, %v934_v60 }
  0xae   : > { %1044 = vperm.xlu1 %2220, %v1008_v27  }
  0xaf   : > { %vm969_vm7 = vcmp.ne.s32.totalorder %v948_v12, %v2922_v56 }
  0xb1   : > { %1041 = vperm.xlu0 %2219, %v1007_v28  }
  0xb2   : > { %1050 = vperm.xlu1 %2220, %v1010_v31  }
  0xb3   : > { %2057 = vmatpush3.bf16.xpose.msra.mxu0 %v2227_v9  ;;  %2089 = vmatpush3.bf16.xpose.msra.mxu1 %v2228_v10 }
  0xb4   : > { %2058 = vmatprep.subr.bf16.mxu0 %v2229_v13  ;;  %2090 = vmatprep.subr.bf16.mxu1 %v2230_v14 }
  0xb5   : > { %1047 = vperm.xlu0 %2219, %v1009_v32   ;;  %v935_v32 = vadd.s32 48, %v2917_v51 }
  0xb6   : > { %1056 = vperm.xlu1 %2220, %v1012_v33  }
  0xb9   : > { %1053 = vperm.xlu0 %2219, %v1011_v34  }
  0xbb   : > { %2059 = vmatpush3.bf16.xpose.msra.mxu0 %v2229_v13  ;;  %2091 = vmatpush3.bf16.xpose.msra.mxu1 %v2230_v14  ;;  %v2971_v13 = vld [vmem:[%s3670_s30] ss:$0 sm:$0xff]  ;;  %v946_v14 = vadd.s32 %v2920_v55, %v2917_v51 }
  0xbc   : > { %2060 = vmatprep.subr.bf16.mxu0 %v2231_v15  ;;  %2092 = vmatprep.subr.bf16.mxu1 %v2232_v18 }
  0xbd   : > { %1059 = vperm.xlu0 %2219, %v1013_v35   ;;  %vm967_vm9 = vcmp.ne.s32.totalorder %v946_v14, %v2922_v56 }
  0xc3   : > { %2061 = vmatpush3.bf16.xpose.msra.mxu0 %v2231_v15  ;;  %2093 = vmatpush3.bf16.xpose.msra.mxu1 %v2232_v18  ;;  %v949_v15 = vadd.s32 %v2920_v55, %v932_v11 }
  0xc4   : > { %2062 = vmatprep.subr.bf16.mxu0 %v2233_v23  ;;  %2094 = vmatprep.subr.bf16.mxu1 %v2234_v24 }
  0xc5   : > { %vm970_vm10 = vcmp.ne.s32.totalorder %v949_v15, %v2922_v56 }
  0xcb   : > { %2063 = vmatpush3.bf16.xpose.msra.mxu0 %v2233_v23  ;;  %2095 = vmatpush3.bf16.xpose.msra.mxu1 %v2234_v24 }
  0xcc   : > { %2064 = vmatprep.subr.bf16.mxu0 %v2235_v29  ;;  %2096 = vmatprep.subr.bf16.mxu1 %v2236_v30 }
  0xd3   : > { %2065 = vmatpush3.bf16.xpose.msra.mxu0 %v2235_v29  ;;  %2097 = vmatpush3.bf16.xpose.msra.mxu1 %v2236_v30 }
  0xda   : > { %2067 = vmatmul.mubr.bf16.vlgmr.msra.gmra.mrb[0].mxu0 %v2239_v36  ;;  %2099 = vmatmul.mubr.bf16.vlgmr.msra.gmra.mrb[0].mxu1 %v2240_v37 }
  0xdb   : > { %2070 = vmatprep.mubr.bf16.mxu0 %v2243_v38  ;;  %2102 = vmatprep.mubr.bf16.mxu1 %v2241_v39 }
  0xe2   : > { %2071 = vmatmul.mubr.bf16.gmra.mrb[4].mxu0 %v2244_v40  ;;  %2103 = vmatmul.mubr.bf16.gmra.mrb[4].mxu1 %v2242_v41  ;;  %v952_v41 = vadd.s32 %v2920_v55, %v935_v32  ;;  %v937_v32 = vadd.s32 64, %v2917_v51 }
  0xe3   : > { %2074 = vmatprep.mubr.bf16.mxu0 %v2247_v42  ;;  %2106 = vmatprep.mubr.bf16.mxu1 %v2245_v43  ;;  %v933_v42 = vadd.s32 32, %v2917_v51 }
  0xe4   : > { %vm973_vm15 = vcmp.ne.s32.totalorder %v952_v41, %v2922_v56 }
  0xe5   : > { %v950_v54 = vadd.s32 %v2920_v55, %v933_v42 }
  0xea   : > { %2075 = vmatmul.mubr.bf16.gmra.mrb[8].mxu0 %v2248_v44  ;;  %2107 = vmatmul.mubr.bf16.gmra.mrb[8].mxu1 %v2246_v45  ;;  %v936_v45 = vadd.s32 56, %v2917_v51 }
  0xeb   : > { %2078 = vmatprep.mubr.bf16.mxu0 %v2251_v46  ;;  %2110 = vmatprep.mubr.bf16.mxu1 %v2249_v47 }
  0xec   : > { %v953_v58 = vadd.s32 %v2920_v55, %v936_v45 }
  0xf2   : > { %2079 = vmatmul.mubr.bf16.gmra.mrb[12].mxu0 %v2252_v48  ;;  %2111 = vmatmul.mubr.bf16.gmra.mrb[12].mxu1 %v2250_v49 }
 0x11d   : > { %v1024_v4 = vpop.permute.xlu1 %1023 }
 0x11e   : > { %v1018_v5 = vpop.permute.xlu0 %1017  ;;  %vm1070_vm8 = vcmp.eq.s32.totalorder %v1024_v4, %v2971_v13 }
 0x11f   : > { %vm1068_vm11 = vcmp.eq.s32.totalorder %v1018_v5, %v2971_v13 }
 0x121   : > { %v1027_v6 = vpop.permute.xlu1 %1026 }
 0x122   : > { %vm1071_vm12 = vcmp.eq.s32.totalorder %v1027_v6, %v2971_v13 }
 0x124   : > { %v1021_v7 = vpop.permute.xlu0 %1020 }
 0x125   : > { %v2960_v9 = vpop.permute.xlu1 %1032  ;;  %vm1069_vm14 = vcmp.eq.s32.totalorder %v1021_v7, %v2971_v13 }
 0x128   : > { %v2962_v10 = vpop.permute.xlu0 %1029 }
 0x129   : > { %v2977_v17 = vpop.permute.xlu1 %1038 }
 0x12c   : > { %v2981_v18 = vpop.permute.xlu0 %1035 }
 0x12d   : > { %v3012_v34 = vpop.permute.xlu1 %1044  ;;  %vm1074_vm0 = vcmp.eq.s32.totalorder %v2981_v18, %v2971_v13 }
 0x130   : > { %v3017_v36 = vpop.permute.xlu0 %1041 }
 0x131   : > { %v1051_v61 = vpop.permute.xlu1 %1050 }
 0x134   : > { %v1048_v2 = vpop.permute.xlu0 %1047 }
 0x138   : > { %v1054_v42 = vpop.permute.xlu0 %1053 }
 0x1ad   : > { %v2983_v19 = vpop.f32.mrb[0].mxu0  ;;  %v2100_v20 = vpop.f32.mrb[0].mxu1 }
 0x1ae   : > { %1120 = vmax.xlane.f32.xlu0 %v2983_v19  ;;  %v2987_v21 = vpop.f32.mrb[1].mxu0  ;;  %v2989_v22 = vsel %vm969_vm7, %v2100_v20, 0.0  ;;  %v864_v23 = vpop.f32.mrb[1].mxu1  ;;  %vm971_vm7 = vcmp.ne.s32.totalorder %v950_v54, %v2922_v56 }
 0x1af   : > { %v2991_v24 = vpop.f32.mrb[2].mxu0  ;;  %v2996_v26 = vsel %vm1070_vm8, %v2989_v22, 0.0  ;;  %v2101_v27 = vpop.f32.mrb[2].mxu1  ;;  %v3001_v29 = vsel %vm967_vm9, %v864_v23, 0.0  ;;  %vm1078_vm8 = vcmp.eq.s32.totalorder %v1048_v2, %v2971_v13  ;;  %vm974_vm9 = vcmp.ne.s32.totalorder %v953_v58, %v2922_v56 }
 0x1b0   : > { %v2998_v28 = vpop.f32.mrb[3].mxu0  ;;  %v867_v30 = vpop.f32.mrb[3].mxu1  ;;  %v3005_v31 = vsel %vm970_vm10, %v2101_v27, 0.0  ;;  %v1471_v33 = vmul.f32 %v2983_v19, %v2996_v26  ;;  %v3015_v35 = vsel %vm1068_vm11, %v3001_v29, 0.0  ;;  %vm1072_vm10 = vcmp.eq.s32.totalorder %v2962_v10, %v2971_v13 }
 0x1b1   : > { %1118 = vmax.xlane.f32.xlu1 %v2998_v28  ;;  %v3020_v37 = vsel %vm1071_vm12, %v3005_v31, 0.0  ;;  %v3025_v39 = vsel %vm968_vm13, %v867_v30, 0.0  ;;  %v1469_v46 = vmul.f32 %v3015_v35, %v2987_v21  ;;  %vm1075_vm11 = vcmp.eq.s32.totalorder %v2977_v17, %v2971_v13 }
 0x1b2   : > { %1116 = vmax.xlane.f32.xlu0 %v2987_v21  ;;  %v1472_v49 = vmul.f32 %v2991_v24, %v3020_v37  ;;  %v3042_v52 = vsel %vm1069_vm14, %v3025_v39, 0.0  ;;  %v938_v10 = vadd.s32 72, %v2917_v51  ;;  %vm1073_vm12 = vcmp.eq.s32.totalorder %v2960_v9, %v2971_v13 }
 0x1b3   : > { %v1470_v0 = vmul.f32 %v3042_v52, %v2998_v28  ;;  %vm1080_vm13 = vcmp.eq.s32.totalorder %v1054_v42, %v2971_v13  ;;  %v3209_v42 = vld [vmem:[#allocation2 + $0x10] sm:$0xff]  ;;  %vm1436_vm14 = vcmask 7168  }
 0x1b4   : > { %3672 = vst [vmem:[#allocation19_spill] sm:$0xff] %v3209_v42 }
 0x1b5   : > { %1489 = vadd.xlane.f32.xlu1 %v1471_v33  ;;  %v3022_v38 = vpop.f32.mrb[4].mxu0  ;;  %v2104_v40 = vpop.f32.mrb[4].mxu1 }
 0x1b6   : > { %1122 = vmax.xlane.f32.xlu0 %v2991_v24  ;;  %v3030_v43 = vpop.f32.mrb[5].mxu0  ;;  %v880_v44 = vpop.f32.mrb[5].mxu1  ;;  %v3052_v4 = vsel %vm973_vm15, %v2104_v40, 0.0 }
 0x1b7   : > { %v3035_v47 = vpop.f32.mrb[6].mxu0  ;;  %v2105_v48 = vpop.f32.mrb[6].mxu1  ;;  %v3076_v15 = vsel %vm1074_vm0, %v3052_v4, 0.0  ;;  %v3086_v57 = vsel %vm971_vm7, %v880_v44, 0.0 }
 0x1b8   : > { %v3039_v50 = vpop.f32.mrb[7].mxu0  ;;  %v883_v53 = vpop.f32.mrb[7].mxu1  ;;  %v3100_v30 = vsel %vm974_vm9, %v2105_v48, 0.0  ;;  %v1475_v59 = vmul.f32 %v3022_v38, %v3076_v15  ;;  %v3120_v41 = vsel %vm1072_vm10, %v3086_v57, 0.0  ;;  %v954_v48 = vadd.s32 %v2920_v55, %v937_v32 }
 0x1b9   : > { %1485 = vadd.xlane.f32.xlu1 %v1469_v46  ;;  %v3123_v44 = vsel %vm1075_vm11, %v3100_v30, 0.0  ;;  %v1473_v60 = vmul.f32 %v3120_v41, %v3030_v43  ;;  %v955_v32 = vadd.s32 %v2920_v55, %v938_v10 }
 0x1ba   : > { %1491 = vadd.xlane.f32.xlu0 %v1472_v49  ;;  %v1476_v62 = vmul.f32 %v3035_v47, %v3123_v44 }
 0x1bd   : > { %1128 = vmax.xlane.f32.xlu1 %v3022_v38  ;;  %v3055_v5 = vpop.f32.mrb[8].mxu0  ;;  %v2108_v6 = vpop.f32.mrb[8].mxu1 }
 0x1be   : > { %1487 = vadd.xlane.f32.xlu0 %v1470_v0  ;;  %v3058_v7 = vpop.f32.mrb[9].mxu0  ;;  %v3066_v11 = vsel %vm977_vm1, %v2108_v6, 0.0  ;;  %v896_v12 = vpop.f32.mrb[9].mxu1  ;;  %vm1079_vm1 = vcmp.eq.s32.totalorder %v1051_v61, %v2971_v13 }
 0x1bf   : > { %v3068_v14 = vpop.f32.mrb[10].mxu0  ;;  %v3079_v16 = vsel %vm1078_vm8, %v3066_v11, 0.0  ;;  %v2109_v20 = vpop.f32.mrb[10].mxu1 }
 0x1c0   : > { %v3081_v23 = vpop.f32.mrb[11].mxu0  ;;  %v3091_v25 = vsel %vm978_vm2, %v2109_v20, 0.0  ;;  %v899_v18 = vpop.f32.mrb[11].mxu1  ;;  %v3096_v27 = vmul.f32 %v3055_v5, %v3079_v16  ;;  %vm972_vm2 = vcmp.ne.s32.totalorder %v951_v8, %v2922_v56 }
 0x1c1   : > { %1124 = vmax.xlane.f32.xlu1 %v3030_v43  ;;  %v3104_v33 = vsel %vm1079_vm1, %v3091_v25, 0.0  ;;  %v3127_v46 = vsel %vm972_vm2, %v883_v53, 0.0 }
 0x1c2   : > { %1130 = vmax.xlane.f32.xlu0 %v3035_v47  ;;  %v3112_v40 = vmul.f32 %v3068_v14, %v3104_v33  ;;  %v3156_v2 = vsel %vm1073_vm12, %v3127_v46, 0.0 }
 0x1c3   : > { %v1474_v3 = vmul.f32 %v3156_v2, %v3039_v50 }
 0x1c5   : > { %1497 = vadd.xlane.f32.xlu1 %v1475_v59  ;;  %v3125_v45 = vpop.f32.mrb[12].mxu0  ;;  %v2112_v49 = vpop.f32.mrb[12].mxu1 }
 0x1c6   : > { %1126 = vmax.xlane.f32.xlu0 %v3039_v50  ;;  %v3131_v17 = vpop.f32.mrb[13].mxu0  ;;  %v3137_v54 = vsel %vm981_vm3, %v2112_v49, 0.0  ;;  %v912_v58 = vpop.f32.mrb[13].mxu1  ;;  %vm975_vm3 = vcmp.ne.s32.totalorder %v954_v48, %v2922_v56 }
 0x1c7   : > { %v3141_v53 = vpop.f32.mrb[14].mxu0  ;;  %v3149_v51 = vsel %vm979_vm4, %v912_v58, 0.0  ;;  %v2113_v61 = vpop.f32.mrb[14].mxu1  ;;  %v3179_v59 = vsel %vm975_vm3, %v896_v12, 0.0  ;;  %vm1076_vm4 = vcmp.eq.s32.totalorder %v3017_v36, %v2971_v13  ;;  %v3216_v58 = vld [vmem:[#allocation2 + $0x8] sm:$0xff] }
 0x1c8   : > { %3671 = vst [vmem:[#allocation18_spill] sm:$0xff] %v3149_v51  ;;  %v3153_v0 = vpop.f32.mrb[15].mxu0  ;;  %v3159_v6 = vsel %vm1080_vm13, %v3149_v51, 0.0  ;;  %v3164_v9 = vsel %vm982_vm6, %v2113_v61, 0.0  ;;  %v915_v63 = vpop.f32.mrb[15].mxu1  ;;  %v3186_v1 = vsel %vm1076_vm4, %v3179_v59, 0.0  ;;  %vm1077_vm6 = vcmp.eq.s32.totalorder %v3012_v34, %v2971_v13 }
 0x1c9   : > { %1493 = vadd.xlane.f32.xlu1 %v1473_v60  ;;  %v3170_v8 = vsel %vm980_vm5, %v915_v63, 0.0  ;;  %v3174_v20 = vmul.f32 %v3159_v6, %v3131_v17  ;;  %vm976_vm5 = vcmp.ne.s32.totalorder %v955_v32, %v2922_v56  ;;  %v1477_v12 = vmul.f32 %v3186_v1, %v3058_v7  ;;  %v3207_v34 = vpop.permute.xlu0 %1059  ;;  %v3211_v48 = vpop.permute.xlu1 %1056  ;;  %3674 = vst [vmem:[#allocation21_spill] sm:$0xff] %v3216_v58  ;;  %v3218_v60 = vld [vmem:[#allocation2] sm:$0xff] }
 0x1ca   : > { %1499 = vadd.xlane.f32.xlu0 %v1476_v62  ;;  %v3189_v55 = vsel %vm976_vm5, %v899_v18, 0.0  ;;  %v1014_v18 = vld [vmem:[%s2786_s14 + $0x78] sm:$0xff]  ;;  %3675 = vst [vmem:[#allocation22_spill] sm:$0xff] %v3218_v60  ;;  %v3259_v51 = vld [vmem:[#allocation2 + $0x20] sm:$0xff]  ;;  %vm1081_vm15 = vcmp.eq.s32.totalorder %v3211_v48, %v2971_v13  ;;  %vm1082_vm7 = vcmp.eq.s32.totalorder %v3207_v34, %v2971_v13 }
 0x1cb   : > { %v3197_v36 = vsel %vm1077_vm6, %v3189_v55, 0.0  ;;  %3682 = vst [vmem:[#allocation29_spill] sm:$0xff] %v3259_v51  ;;  %v3397_v48 = vsel %vm1082_vm7, %v3137_v54, 0.0 }
 0x1cc   : > { %v1478_v56 = vmul.f32 %v3197_v36, %v3081_v23 }
 0x1cd   : > { %1136 = vmax.xlane.f32.xlu1 %v3055_v5 }
 0x1ce   : > { %1495 = vadd.xlane.f32.xlu0 %v1474_v3 }
 0x1d1   : > { %1132 = vmax.xlane.f32.xlu1 %v3058_v7 }
 0x1d2   : > { %1138 = vmax.xlane.f32.xlu0 %v3068_v14 }
 0x1d5   : > { %1501 = vadd.xlane.f32.xlu1 %v1477_v12  ;;  %v1455_v12 = vld [vmem:[#allocation4 + $0x10] sm:$0xff] }
 0x1d6   : > { %1134 = vmax.xlane.f32.xlu0 %v3081_v23 }
 0x1d9   : > { %1144 = vmax.xlane.f32.xlu1 %v3125_v45 }
 0x1da   : > { %1503 = vadd.xlane.f32.xlu0 %v1478_v56 }
 0x1dd   : > { %1140 = vmax.xlane.f32.xlu1 %v3131_v17 }
 0x1de   : > { %1146 = vmax.xlane.f32.xlu0 %v3141_v53 }
 0x1e2   : > { %1142 = vmax.xlane.f32.xlu0 %v3153_v0 }
 0x1ee   : > { %1062 = vperm.xlu1 %2220, %v1014_v18   ;;  %v3236_v18 = vld [vmem:[#allocation2 + $0x18] sm:$0xff] }
 0x1ef   : > { %3678 = vst [vmem:[#allocation25_spill] sm:$0xff] %v3236_v18 }
 0x23b   : > { %v1121_v49 = vpop.xlane.xlu0 %1120 }
 0x23c   : > { %v3214_v10 = vmax.f32 %v3209_v42, %v1121_v49 }
 0x23e   : > { %3673 = vst [vmem:[#allocation20_spill] sm:$0xff] %v3214_v10  ;;  %1631 = vst.msk [vmem:[#allocation2 + $0x10] sm:$0xff] %vm1436_vm14, %v3214_v10  ;;  %v1119_v62 = vpop.xlane.xlu1 %1118  ;;  %1176 = vperm.xlu1 %2220, %v3214_v10  }
 0x23f   : > { %v3226_v63 = vmax.f32 %v3216_v58, %v1119_v62  ;;  %v1117_v32 = vpop.xlane.xlu0 %1116  ;;  %v1453_v58 = vld [vmem:[#allocation4] sm:$0xff] }
 0x240   : > { %v3229_v3 = vmax.f32 %v3218_v60, %v1117_v32 }
 0x241   : > { %3676 = vst [vmem:[#allocation23_spill] sm:$0xff] %v3226_v63  ;;  %1630 = vst.msk [vmem:[#allocation2 + $0x8] sm:$0xff] %vm1436_vm14, %v3226_v63  ;;  %1171 = vperm.xlu0 %2219, %v3226_v63   ;;  %v1456_v63 = vld [vmem:[#allocation4 + $0x18] sm:$0xff] }
 0x242   : > { %3677 = vst [vmem:[#allocation24_spill] sm:$0xff] %v3229_v3  ;;  %1629 = vst.msk [vmem:[#allocation2] sm:$0xff] %vm1436_vm14, %v3229_v3  ;;  %v1490_v62 = vpop.xlane.xlu1 %1489  ;;  %1166 = vperm.xlu1 %2220, %v3229_v3  }
 0x243   : > { %v1519_v32 = vadd.f32 %v1490_v62, %v1455_v12  ;;  %v1123_v61 = vpop.xlane.xlu0 %1122  ;;  %v3252_v62 = vld [vmem:[#allocation2 + $0x30] sm:$0xff] }
 0x244   : > { %v3244_v56 = vmax.f32 %v3236_v18, %v1123_v61  ;;  %3680 = vst [vmem:[#allocation27_spill] sm:$0xff] %v3252_v62  ;;  %v1454_v61 = vld [vmem:[#allocation4 + $0x8] sm:$0xff] }
 0x245   : > { %1535 = vst.msk [vmem:[#allocation4 + $0x10] sm:$0xff] %vm1436_vm14, %v1519_v32 }
 0x246   : > { %3679 = vst [vmem:[#allocation26_spill] sm:$0xff] %v3244_v56  ;;  %1632 = vst.msk [vmem:[#allocation2 + $0x18] sm:$0xff] %vm1436_vm14, %v3244_v56  ;;  %v1486_v49 = vpop.xlane.xlu1 %1485  ;;  %1181 = vperm.xlu1 %2220, %v3244_v56   ;;  %v3303_v56 = vld [vmem:[#allocation2 + $0x40] sm:$0xff] }
 0x247   : > { %v1517_v60 = vadd.f32 %v1486_v49, %v1453_v58  ;;  %v1492_v3 = vpop.xlane.xlu0 %1491  ;;  %3688 = vst [vmem:[#allocation35_spill] sm:$0xff] %v3303_v56 }
 0x248   : > { %v1520_v12 = vadd.f32 %v1492_v3, %v1456_v63 }
 0x249   : > { %1533 = vst.msk [vmem:[#allocation4] sm:$0xff] %vm1436_vm14, %v1517_v60  ;;  %v3266_v60 = vld [vmem:[#allocation2 + $0x38] sm:$0xff] }
 0x24a   : > { %1536 = vst.msk [vmem:[#allocation4 + $0x18] sm:$0xff] %vm1436_vm14, %v1520_v12  ;;  %v1129_v32 = vpop.xlane.xlu1 %1128  ;;  %3683 = vst [vmem:[#allocation30_spill] sm:$0xff] %v3266_v60  ;;  %v1459_v12 = vld [vmem:[#allocation4 + $0x30] sm:$0xff] }
 0x24b   : > { %v3257_v42 = vmax.f32 %v3252_v62, %v1129_v32  ;;  %v1488_v10 = vpop.xlane.xlu0 %1487  ;;  %v3280_v32 = vld [vmem:[#allocation2 + $0x28] sm:$0xff] }
 0x24c   : > { %v1518_v18 = vadd.f32 %v1488_v10, %v1454_v61  ;;  %3686 = vst [vmem:[#allocation33_spill] sm:$0xff] %v3280_v32 }
 0x24d   : > { %3681 = vst [vmem:[#allocation28_spill] sm:$0xff] %v3257_v42  ;;  %1635 = vst.msk [vmem:[#allocation2 + $0x30] sm:$0xff] %vm1436_vm14, %v3257_v42  ;;  %1196 = vperm.xlu0 %2219, %v3257_v42  }
 0x24e   : > { %1534 = vst.msk [vmem:[#allocation4 + $0x8] sm:$0xff] %vm1436_vm14, %v1518_v18  ;;  %v1125_v63 = vpop.xlane.xlu1 %1124 }
 0x24f   : > { %v3270_v3 = vmax.f32 %v3259_v51, %v1125_v63  ;;  %v1131_v49 = vpop.xlane.xlu0 %1130  ;;  %v1457_v51 = vld [vmem:[#allocation4 + $0x20] sm:$0xff] }
 0x250   : > { %v3273_v10 = vmax.f32 %v3266_v60, %v1131_v49 }
 0x251   : > { %3684 = vst [vmem:[#allocation31_spill] sm:$0xff] %v3270_v3  ;;  %1633 = vst.msk [vmem:[#allocation2 + $0x20] sm:$0xff] %vm1436_vm14, %v3270_v3  ;;  %1186 = vperm.xlu0 %2219, %v3270_v3   ;;  %v1460_v3 = vld [vmem:[#allocation4 + $0x38] sm:$0xff] }
 0x252   : > { %3685 = vst [vmem:[#allocation32_spill] sm:$0xff] %v3273_v10  ;;  %1636 = vst.msk [vmem:[#allocation2 + $0x38] sm:$0xff] %vm1436_vm14, %v3273_v10  ;;  %v1498_v63 = vpop.xlane.xlu1 %1497  ;;  %1201 = vperm.xlu1 %2220, %v3273_v10  }
 0x253   : > { %v1523_v49 = vadd.f32 %v1498_v63, %v1459_v12  ;;  %v1127_v58 = vpop.xlane.xlu0 %1126  ;;  %v3296_v63 = vld [vmem:[#allocation2 + $0x50] sm:$0xff] }
 0x254   : > { %v3288_v61 = vmax.f32 %v3280_v32, %v1127_v58  ;;  %v1458_v58 = vld [vmem:[#allocation4 + $0x28] sm:$0xff] }
 0x255   : > { %1539 = vst.msk [vmem:[#allocation4 + $0x30] sm:$0xff] %vm1436_vm14, %v1523_v49 }
 0x256   : > { %1634 = vst.msk [vmem:[#allocation2 + $0x28] sm:$0xff] %vm1436_vm14, %v3288_v61  ;;  %v1494_v18 = vpop.xlane.xlu1 %1493  ;;  %1191 = vperm.xlu1 %2220, %v3288_v61  }
 0x257   : > { %v1521_v60 = vadd.f32 %v1494_v18, %v1457_v51  ;;  %v1500_v10 = vpop.xlane.xlu0 %1499 }
 0x258   : > { %v1524_v12 = vadd.f32 %v1500_v10, %v1460_v3 }
 0x259   : > { %1537 = vst.msk [vmem:[#allocation4 + $0x20] sm:$0xff] %vm1436_vm14, %v1521_v60  ;;  %v3310_v60 = vld [vmem:[#allocation2 + $0x58] sm:$0xff] }
 0x25a   : > { %1540 = vst.msk [vmem:[#allocation4 + $0x38] sm:$0xff] %vm1436_vm14, %v1524_v12  ;;  %v1137_v49 = vpop.xlane.xlu1 %1136  ;;  %v1461_v12 = vld [vmem:[#allocation4 + $0x40] sm:$0xff] }
 0x25b   : > { %v3301_v62 = vmax.f32 %v3296_v63, %v1137_v49  ;;  %v1496_v42 = vpop.xlane.xlu0 %1495  ;;  %v3324_v49 = vld [vmem:[#allocation2 + $0x48] sm:$0xff] }
 0x25c   : > { %v1522_v32 = vadd.f32 %v1496_v42, %v1458_v58  ;;  %3691 = vst [vmem:[#allocation38_spill] sm:$0xff] %v3324_v49 }
 0x25d   : > { %3687 = vst [vmem:[#allocation34_spill] sm:$0xff] %v3301_v62  ;;  %1639 = vst.msk [vmem:[#allocation2 + $0x50] sm:$0xff] %vm1436_vm14, %v3301_v62  ;;  %1216 = vperm.xlu0 %2219, %v3301_v62   ;;  %v3352_v62 = vld [vmem:[#allocation2 + $0x78] sm:$0xff] }
 0x25e   : > { %1538 = vst.msk [vmem:[#allocation4 + $0x28] sm:$0xff] %vm1436_vm14, %v1522_v32  ;;  %v1133_v3 = vpop.xlane.xlu1 %1132 }
 0x25f   : > { %v3314_v10 = vmax.f32 %v3303_v56, %v1133_v3  ;;  %v1139_v18 = vpop.xlane.xlu0 %1138  ;;  %v3334_v56 = vld [vmem:[#allocation2 + $0x70] sm:$0xff] }
 0x260   : > { %v3317_v42 = vmax.f32 %v3310_v60, %v1139_v18 }
 0x261   : > { %3689 = vst [vmem:[#allocation36_spill] sm:$0xff] %v3314_v10  ;;  %1637 = vst.msk [vmem:[#allocation2 + $0x40] sm:$0xff] %vm1436_vm14, %v3314_v10  ;;  %1206 = vperm.xlu0 %2219, %v3314_v10   ;;  %v1462_v10 = vld [vmem:[#allocation4 + $0x48] sm:$0xff] }
 0x262   : > { %3690 = vst [vmem:[#allocation37_spill] sm:$0xff] %v3317_v42  ;;  %1640 = vst.msk [vmem:[#allocation2 + $0x58] sm:$0xff] %vm1436_vm14, %v3317_v42  ;;  %v1502_v3 = vpop.xlane.xlu1 %1501  ;;  %1221 = vperm.xlu1 %2220, %v3317_v42   ;;  %v3345_v42 = vld [vmem:[#allocation2 + $0x60] sm:$0xff] }
 0x263   : > { %v1525_v18 = vadd.f32 %v1502_v3, %v1461_v12  ;;  %v1135_v51 = vpop.xlane.xlu0 %1134 }
 0x264   : > { %v3332_v58 = vmax.f32 %v3324_v49, %v1135_v51 }
 0x265   : > { %1541 = vst.msk [vmem:[#allocation4 + $0x40] sm:$0xff] %vm1436_vm14, %v1525_v18  ;;  %v3366_v18 = vld [vmem:[#allocation2 + $0x68] sm:$0xff] }
 0x266   : > { %3692 = vst [vmem:[#allocation39_spill] sm:$0xff] %v3332_v58  ;;  %1638 = vst.msk [vmem:[#allocation2 + $0x48] sm:$0xff] %vm1436_vm14, %v3332_v58  ;;  %v1145_v32 = vpop.xlane.xlu1 %1144  ;;  %1211 = vperm.xlu1 %2220, %v3332_v58  }
 0x267   : > { %v3343_v12 = vmax.f32 %v3334_v56, %v1145_v32  ;;  %v1504_v3 = vpop.xlane.xlu0 %1503 }
 0x268   : > { %v1526_v51 = vadd.f32 %v1504_v3, %v1462_v10 }
 0x269   : > { %1643 = vst.msk [vmem:[#allocation2 + $0x70] sm:$0xff] %vm1436_vm14, %v3343_v12  ;;  %1236 = vperm.xlu0 %2219, %v3343_v12  }
 0x26a   : > { %1542 = vst.msk [vmem:[#allocation4 + $0x48] sm:$0xff] %vm1436_vm14, %v1526_v51  ;;  %v1141_v58 = vpop.xlane.xlu1 %1140  ;;  %v1097_v51 = vsel %vm1081_vm15, %v3170_v8, 0.0 }
 0x26b   : > { %v3356_v32 = vmax.f32 %v3345_v42, %v1141_v58  ;;  %v1147_v49 = vpop.xlane.xlu0 %1146 }
 0x26c   : > { %v3359_v10 = vmax.f32 %v3352_v62, %v1147_v49 }
 0x26d   : > { %3693 = vst [vmem:[#allocation40_spill] sm:$0xff] %v3356_v32  ;;  %1641 = vst.msk [vmem:[#allocation2 + $0x60] sm:$0xff] %vm1436_vm14, %v3356_v32  ;;  %1226 = vperm.xlu0 %2219, %v3356_v32  }
 0x26e   : > { %3694 = vst [vmem:[#allocation41_spill] sm:$0xff] %v3359_v10  ;;  %1644 = vst.msk [vmem:[#allocation2 + $0x78] sm:$0xff] %vm1436_vm14, %v3359_v10  ;;  %1241 = vperm.xlu1 %2220, %v3359_v10   ;;  %v1063_v32 = vpop.permute.xlu1 %1062 }
 0x26f   : > { %v1143_v58 = vpop.xlane.xlu0 %1142  ;;  %vm1083_vm0 = vcmp.eq.s32.totalorder %v1063_v32, %v2971_v13 }
 0x270   : > { %v3374_v49 = vmax.f32 %v3366_v18, %v1143_v58  ;;  %v1482_v58 = vmul.f32 %v1097_v51, %v3153_v0  ;;  %v3388_v10 = vsel %vm1083_vm0, %v3164_v9, 0.0 }
 0x271   : > { %v1484_v3 = vmul.f32 %v3141_v53, %v3388_v10 }
 0x272   : > { %1642 = vst.msk [vmem:[#allocation2 + $0x68] sm:$0xff] %vm1436_vm14, %v3374_v49  ;;  %1231 = vperm.xlu1 %2220, %v3374_v49  }
 0x28c   : > { %1507 = vadd.xlane.f32.xlu0 %v3112_v40  ;;  %v1483_v40 = vmul.f32 %v3125_v45, %v3397_v48 }
 0x290   : > { %1511 = vadd.xlane.f32.xlu0 %v1482_v58 }
 0x294   : > { %1515 = vadd.xlane.f32.xlu0 %v1484_v3 }
 0x296   : > { %1505 = vadd.xlane.f32.xlu1 %v3096_v27 }
 0x298   : > { %1567 = vadd.xlane.f32.xlu0 %v3042_v52 }
 0x29a   : > { %1509 = vadd.xlane.f32.xlu1 %v3174_v20 }
 0x29c   : > { %1571 = vadd.xlane.f32.xlu0 %v3020_v37 }
 0x29e   : > { %1513 = vadd.xlane.f32.xlu1 %v1483_v40 }
 0x2a0   : > { %1575 = vadd.xlane.f32.xlu0 %v3156_v2 }
 0x2a2   : > { %1565 = vadd.xlane.f32.xlu1 %v3015_v35 }
 0x2a4   : > { %1579 = vadd.xlane.f32.xlu0 %v3123_v44 }
 0x2a6   : > { %1569 = vadd.xlane.f32.xlu1 %v2996_v26 }
 0x2a8   : > { %1583 = vadd.xlane.f32.xlu0 %v3197_v36 }
 0x2aa   : > { %1573 = vadd.xlane.f32.xlu1 %v3120_v41 }
 0x2ac   : > { %1587 = vadd.xlane.f32.xlu0 %v3104_v33 }
 0x2ae   : > { %1577 = vadd.xlane.f32.xlu1 %v3076_v15 }
 0x2b0   : > { %1591 = vadd.xlane.f32.xlu0 %v1097_v51 }
 0x2b2   : > { %1581 = vadd.xlane.f32.xlu1 %v3186_v1 }
 0x2b6   : > { %1585 = vadd.xlane.f32.xlu1 %v3079_v16 }
 0x2ba   : > { %1589 = vadd.xlane.f32.xlu1 %v3159_v6 }
 0x2bd   : > { %v1177_v13 = vpop.permute.xlu1 %1176 }
 0x2be   : > { %v1246_v35 = vsub.f32 %v2983_v19, %v1177_v13 }
 0x2c0   : > { %v1264_v37 = vmul.f32 1.442695, %v1246_v35  ;;  %v1172_v26 = vpop.permute.xlu0 %1171 }
 0x2c1   : > { %v1245_v52 = vsub.f32 %v2998_v28, %v1172_v26  ;;  %v1167_v27 = vpop.permute.xlu1 %1166 }
 0x2c2   : > { %2253 = vpow2.f32 %v1264_v37  ;;  %v1244_v33 = vsub.f32 %v2987_v21, %v1167_v27 }
 0x2c3   : > { %v1262_v41 = vmul.f32 1.442695, %v1245_v52 }
 0x2c4   : > { %v1260_v15 = vmul.f32 1.442695, %v1244_v33 }
 0x2c5   : > { %2255 = vpow2.f32 %v1262_v41  ;;  %v1182_v44 = vpop.permute.xlu1 %1181 }
 0x2c6   : > { %2257 = vpow2.f32 %v1260_v15  ;;  %v1247_v16 = vsub.f32 %v2991_v24, %v1182_v44 }
 0x2c8   : > { %v1266_v2 = vmul.f32 1.442695, %v1247_v16 }
 0x2ca   : > { %2259 = vpow2.f32 %v1266_v2 }
 0x2cc   : > { %v2254_v6 = vpop.eup %2253  ;;  %v1197_v20 = vpop.permute.xlu0 %1196 }
 0x2cd   : > { %v1250_v19 = vsub.f32 %v3022_v38, %v1197_v20  ;;  %v1374_v1 = vmul.f32 %v2254_v6, %v2989_v22 }
 0x2cf   : > { %v2256_v28 = vpop.eup %2255  ;;  %v1272_v36 = vmul.f32 1.442695, %v1250_v19  ;;  %1392 = vadd.xlane.f32.xlu0 %v1374_v1 }
 0x2d0   : > { %v2258_v34 = vpop.eup %2257  ;;  %v1187_v21 = vpop.permute.xlu0 %1186  ;;  %v1373_v32 = vmul.f32 %v2256_v28, %v3025_v39 }
 0x2d1   : > { %2261 = vpow2.f32 %v1272_v36  ;;  %v1248_v3 = vsub.f32 %v3030_v43, %v1187_v21  ;;  %v1202_v51 = vpop.permute.xlu1 %1201  ;;  %v1372_v24 = vmul.f32 %v2258_v34, %v3001_v29 }
 0x2d2   : > { %v1251_v58 = vsub.f32 %v3035_v47, %v1202_v51  ;;  %1390 = vadd.xlane.f32.xlu1 %v1373_v32 }
 0x2d3   : > { %v1268_v40 = vmul.f32 1.442695, %v1248_v3  ;;  %1388 = vadd.xlane.f32.xlu0 %v1372_v24 }
 0x2d4   : > { %v2260_v38 = vpop.eup %2259  ;;  %v1274_v22 = vmul.f32 1.442695, %v1251_v58 }
 0x2d5   : > { %2263 = vpow2.f32 %v1268_v40  ;;  %v1192_v13 = vpop.permute.xlu1 %1191  ;;  %v1375_v35 = vmul.f32 %v2260_v38, %v3005_v31 }
 0x2d6   : > { %2265 = vpow2.f32 %v1274_v22  ;;  %v1249_v39 = vsub.f32 %v3039_v50, %v1192_v13 }
 0x2d7   : > { %1394 = vadd.xlane.f32.xlu0 %v1375_v35  ;;  %v3695_v35 = vld [vmem:[#allocation18_spill] sm:$0xff] }
 0x2d8   : > { %v1270_v37 = vmul.f32 1.442695, %v1249_v39 }
 0x2da   : > { %2267 = vpow2.f32 %v1270_v37 }
 0x2db   : > { %v2262_v43 = vpop.eup %2261 }
 0x2dc   : > { %v1217_v26 = vpop.permute.xlu0 %1216  ;;  %v1378_v29 = vmul.f32 %v2262_v43, %v3052_v4 }
 0x2dd   : > { %v1254_v47 = vsub.f32 %v3055_v5, %v1217_v26  ;;  %v1466_v26 = vld [vmem:[#allocation4 + $0x68] sm:$0xff] }
 0x2de   : > { %1400 = vadd.xlane.f32.xlu1 %v1378_v29 }
 0x2df   : > { %v2264_v52 = vpop.eup %2263  ;;  %v1280_v27 = vmul.f32 1.442695, %v1254_v47 }
 0x2e0   : > { %v2266_v33 = vpop.eup %2265  ;;  %v1207_v41 = vpop.permute.xlu0 %1206  ;;  %v1376_v15 = vmul.f32 %v2264_v52, %v3086_v57  ;;  %v1468_v52 = vld [vmem:[#allocation4 + $0x78] sm:$0xff] }
 0x2e1   : > { %2269 = vpow2.f32 %v1280_v27  ;;  %v1252_v31 = vsub.f32 %v3058_v7, %v1207_v41  ;;  %v1222_v50 = vpop.permute.xlu1 %1221  ;;  %v1379_v44 = vmul.f32 %v2266_v33, %v3100_v30  ;;  %v1463_v27 = vld [vmem:[#allocation4 + $0x50] sm:$0xff]  ;;  %v1550_v41 = vld [vmem:[#allocation5 + $0x8] sm:$0xff] }
 0x2e2   : > { %v1255_v16 = vsub.f32 %v3068_v14, %v1222_v50  ;;  %1396 = vadd.xlane.f32.xlu1 %v1376_v15  ;;  %v1465_v15 = vld [vmem:[#allocation4 + $0x60] sm:$0xff] }
 0x2e3   : > { %v1276_v2 = vmul.f32 1.442695, %v1252_v31  ;;  %1402 = vadd.xlane.f32.xlu0 %v1379_v44  ;;  %v1552_v44 = vld [vmem:[#allocation5 + $0x18] sm:$0xff] }
 0x2e4   : > { %v2268_v4 = vpop.eup %2267  ;;  %v1282_v5 = vmul.f32 1.442695, %v1255_v16 }
 0x2e5   : > { %2271 = vpow2.f32 %v1276_v2  ;;  %v1212_v6 = vpop.permute.xlu1 %1211  ;;  %v1377_v20 = vmul.f32 %v2268_v4, %v3127_v46  ;;  %v1467_v4 = vld [vmem:[#allocation4 + $0x70] sm:$0xff] }
 0x2e6   : > { %2273 = vpow2.f32 %v1282_v5  ;;  %v1253_v57 = vsub.f32 %v3081_v23, %v1212_v6 }
 0x2e7   : > { %1398 = vadd.xlane.f32.xlu0 %v1377_v20  ;;  %v1554_v20 = vld [vmem:[#allocation5 + $0x28] sm:$0xff] }
 0x2e8   : > { %v1278_v19 = vmul.f32 1.442695, %v1253_v57  ;;  %v1237_v7 = vpop.permute.xlu0 %1236 }
 0x2e9   : > { %v1258_v1 = vsub.f32 %v3125_v45, %v1237_v7  ;;  %v1549_v7 = vld [vmem:[#allocation5] sm:$0xff] }
 0x2ea   : > { %2275 = vpow2.f32 %v1278_v19 }
 0x2eb   : > { %v2270_v30 = vpop.eup %2269  ;;  %v1288_v14 = vmul.f32 1.442695, %v1258_v1 }
 0x2ec   : > { %v1227_v28 = vpop.permute.xlu0 %1226  ;;  %v1382_v36 = vmul.f32 %v2270_v30, %v3066_v11 }
 0x2ed   : > { %2277 = vpow2.f32 %v1288_v14  ;;  %v1256_v34 = vsub.f32 %v3131_v17, %v1227_v28  ;;  %v1242_v21 = vpop.permute.xlu1 %1241  ;;  %v1556_v14 = vld [vmem:[#allocation5 + $0x38] sm:$0xff] }
 0x2ee   : > { %v1259_v46 = vsub.f32 %v3141_v53, %v1242_v21  ;;  %1408 = vadd.xlane.f32.xlu1 %v1382_v36 }
 0x2ef   : > { %v2272_v32 = vpop.eup %2271  ;;  %v1284_v23 = vmul.f32 1.442695, %v1256_v34  ;;  %v1551_v34 = vld [vmem:[#allocation5 + $0x10] sm:$0xff] }
 0x2f0   : > { %v2274_v3 = vpop.eup %2273  ;;  %v1290_v51 = vmul.f32 1.442695, %v1259_v46  ;;  %v1380_v24 = vmul.f32 %v2272_v32, %v3179_v59  ;;  %v1558_v32 = vld [vmem:[#allocation5 + $0x48] sm:$0xff] }
 0x2f1   : > { %2279 = vpow2.f32 %v1284_v23  ;;  %v1232_v45 = vpop.permute.xlu1 %1231  ;;  %v1383_v58 = vmul.f32 %v2274_v3, %v3091_v25 }
 0x2f2   : > { %2281 = vpow2.f32 %v1290_v51  ;;  %v1257_v11 = vsub.f32 %v3153_v0, %v1232_v45  ;;  %1404 = vadd.xlane.f32.xlu1 %v1380_v24  ;;  %v1553_v51 = vld [vmem:[#allocation5 + $0x20] sm:$0xff] }
 0x2f3   : > { %1410 = vadd.xlane.f32.xlu0 %v1383_v58  ;;  %v1560_v58 = vld [vmem:[#allocation5 + $0x58] sm:$0xff] }
 0x2f4   : > { %v2276_v17 = vpop.eup %2275  ;;  %v1286_v40 = vmul.f32 1.442695, %v1257_v11 }
 0x2f5   : > { %v1381_v53 = vmul.f32 %v2276_v17, %v3189_v55  ;;  %v1464_v55 = vld [vmem:[#allocation4 + $0x58] sm:$0xff] }
 0x2f6   : > { %2283 = vpow2.f32 %v1286_v40  ;;  %v1555_v40 = vld [vmem:[#allocation5 + $0x30] sm:$0xff] }
 0x2f7   : > { %v2278_v38 = vpop.eup %2277  ;;  %1406 = vadd.xlane.f32.xlu0 %v1381_v53 }
 0x2f8   : > { %v1386_v22 = vmul.f32 %v2278_v38, %v3137_v54 }
 0x2fa   : > { %1416 = vadd.xlane.f32.xlu1 %v1386_v22  ;;  %v1562_v22 = vld [vmem:[#allocation5 + $0x68] sm:$0xff] }
 0x2fb   : > { %v2280_v59 = vpop.eup %2279 }
 0x2fc   : > { %v2282_v13 = vpop.eup %2281  ;;  %v1384_v39 = vmul.f32 %v2280_v59, %v3695_v35  ;;  %v1557_v35 = vld [vmem:[#allocation5 + $0x40] sm:$0xff] }
 0x2fd   : > { %v1387_v25 = vmul.f32 %v2282_v13, %v3164_v9 }
 0x2fe   : > { %1412 = vadd.xlane.f32.xlu1 %v1384_v39 }
 0x2ff   : > { %1418 = vadd.xlane.f32.xlu0 %v1387_v25 }
 0x300   : > { %v2284_v0 = vpop.eup %2283 }
 0x301   : > { %v1385_v37 = vmul.f32 %v2284_v0, %v3170_v8 }
 0x302   : > { %1593 = vadd.xlane.f32.xlu1 %v3397_v48 }
 0x303   : > { %1414 = vadd.xlane.f32.xlu0 %v1385_v37  ;;  %v1559_v37 = vld [vmem:[#allocation5 + $0x50] sm:$0xff] }
 0x307   : > { %1595 = vadd.xlane.f32.xlu0 %v3388_v10 }
 0x319   : > { %v1508_v43 = vpop.xlane.xlu0 %1507 }
 0x31a   : > { %v1528_v54 = vadd.f32 %v1508_v43, %v1464_v55 }
 0x31c   : > { %1544 = vst.msk [vmem:[#allocation4 + $0x58] sm:$0xff] %vm1436_vm14, %v1528_v54  ;;  %v1561_v54 = vld [vmem:[#allocation5 + $0x60] sm:$0xff] }
 0x31d   : > { %v1512_v29 = vpop.xlane.xlu0 %1511 }
 0x31e   : > { %v1530_v47 = vadd.f32 %v1512_v29, %v1466_v26 }
 0x320   : > { %1546 = vst.msk [vmem:[#allocation4 + $0x68] sm:$0xff] %vm1436_vm14, %v1530_v47  ;;  %v3696_v47 = vld [vmem:[#allocation19_spill] sm:$0xff] }
 0x321   : > { %v1516_v9 = vpop.xlane.xlu0 %1515 }
 0x322   : > { %v1532_v33 = vadd.f32 %v1516_v9, %v1468_v52  ;;  %v3697_v52 = vld [vmem:[#allocation20_spill] sm:$0xff] }
 0x323   : > { %v1506_v8 = vpop.xlane.xlu1 %1505  ;;  %v3698_v9 = vsub.f32 %v3696_v47, %v3697_v52 }
 0x324   : > { %1548 = vst.msk [vmem:[#allocation4 + $0x78] sm:$0xff] %vm1436_vm14, %v1532_v33  ;;  %v1527_v48 = vadd.f32 %v1506_v8, %v1463_v27  ;;  %v3699_v33 = vld [vmem:[#allocation21_spill] sm:$0xff]  ;;  %v3700_v8 = vld [vmem:[#allocation23_spill] sm:$0xff] }
 0x325   : > { %v1568_v10 = vpop.xlane.xlu0 %1567  ;;  %v1312_v27 = vmul.f32 1.442695, %v3698_v9 }
 0x326   : > { %1543 = vst.msk [vmem:[#allocation4 + $0x50] sm:$0xff] %vm1436_vm14, %v1527_v48  ;;  %v1598_v31 = vadd.f32 %v1568_v10, %v1550_v41  ;;  %v3701_v41 = vsub.f32 %v3699_v33, %v3700_v8  ;;  %v3702_v10 = vld [vmem:[#allocation22_spill] sm:$0xff] }
 0x327   : > { %v1510_v50 = vpop.xlane.xlu1 %1509  ;;  %2285 = vpow2.f32 %v1312_v27  ;;  %v1344_v27 = vld [vmem:[#allocation3 + $0x20] sm:$0xff] }
 0x328   : > { %1614 = vst.msk [vmem:[#allocation5 + $0x8] sm:$0xff] %vm1436_vm14, %v1598_v31  ;;  %v1529_v16 = vadd.f32 %v1510_v50, %v1465_v15  ;;  %v1310_v48 = vmul.f32 1.442695, %v3701_v41  ;;  %v3703_v15 = vld [vmem:[#allocation24_spill] sm:$0xff]  ;;  %v1347_v41 = vld [vmem:[#allocation3 + $0x38] sm:$0xff] }
 0x329   : > { %v1572_v2 = vpop.xlane.xlu0 %1571  ;;  %v3704_v31 = vsub.f32 %v3702_v10, %v3703_v15  ;;  %v3722_v10 = vld [vmem:[#allocation36_spill] sm:$0xff] }
 0x32a   : > { %1545 = vst.msk [vmem:[#allocation4 + $0x60] sm:$0xff] %vm1436_vm14, %v1529_v16  ;;  %v1600_v5 = vadd.f32 %v1572_v2, %v1552_v44  ;;  %2287 = vpow2.f32 %v1310_v48  ;;  %v3705_v44 = vld [vmem:[#allocation25_spill] sm:$0xff]  ;;  %v3706_v16 = vld [vmem:[#allocation26_spill] sm:$0xff]  ;;  %v3721_v48 = vld [vmem:[#allocation35_spill] sm:$0xff] }
 0x32b   : > { %v1514_v6 = vpop.xlane.xlu1 %1513  ;;  %v1308_v50 = vmul.f32 1.442695, %v3704_v31  ;;  %v3707_v2 = vsub.f32 %v3705_v44, %v3706_v16  ;;  %v3723_v15 = vsub.f32 %v3721_v48, %v3722_v10 }
 0x32c   : > { %1616 = vst.msk [vmem:[#allocation5 + $0x18] sm:$0xff] %vm1436_vm14, %v1600_v5  ;;  %v1531_v57 = vadd.f32 %v1514_v6, %v1467_v4  ;;  %v1342_v6 = vld [vmem:[#allocation3 + $0x10] sm:$0xff] }
 0x32d   : > { %v1576_v19 = vpop.xlane.xlu0 %1575  ;;  %2289 = vpow2.f32 %v1308_v50  ;;  %v1314_v4 = vmul.f32 1.442695, %v3707_v2  ;;  %v1324_v31 = vmul.f32 1.442695, %v3723_v15  ;;  %v3724_v50 = vld [vmem:[#allocation37_spill] sm:$0xff] }
 0x32e   : > { %1547 = vst.msk [vmem:[#allocation4 + $0x70] sm:$0xff] %vm1436_vm14, %v1531_v57  ;;  %v1602_v1 = vadd.f32 %v1576_v19, %v1554_v20  ;;  %v3708_v20 = vld [vmem:[#allocation27_spill] sm:$0xff]  ;;  %v3709_v57 = vld [vmem:[#allocation28_spill] sm:$0xff]  ;;  %v3725_v44 = vsub.f32 %v3310_v60, %v3724_v50 }
 0x32f   : > { %v1566_v30 = vpop.xlane.xlu1 %1565  ;;  %2291 = vpow2.f32 %v1314_v4  ;;  %v3710_v19 = vsub.f32 %v3708_v20, %v3709_v57  ;;  %v1345_v57 = vld [vmem:[#allocation3 + $0x28] sm:$0xff] }
 0x330   : > { %1618 = vst.msk [vmem:[#allocation5 + $0x28] sm:$0xff] %vm1436_vm14, %v1602_v1  ;;  %v1597_v28 = vadd.f32 %v1566_v30, %v1549_v7  ;;  %v1330_v16 = vmul.f32 1.442695, %v3725_v44  ;;  %v1563_v44 = vld [vmem:[#allocation5 + $0x70] sm:$0xff] }
 0x331   : > { %v1580_v36 = vpop.xlane.xlu0 %1579  ;;  %v2286_v5 = vpop.eup %2285  ;;  %v1320_v7 = vmul.f32 1.442695, %v3710_v19 }
 0x332   : > { %1613 = vst.msk [vmem:[#allocation5] sm:$0xff] %vm1436_vm14, %v1597_v28  ;;  %v1604_v21 = vadd.f32 %v1580_v36, %v1556_v14  ;;  %v1358_v30 = vmul.f32 %v2286_v5, %v1342_v6  ;;  %v1341_v14 = vld [vmem:[#allocation3 + $0x8] sm:$0xff] }
 0x333   : > { %v1570_v46 = vpop.xlane.xlu1 %1569  ;;  %2293 = vpow2.f32 %v1320_v7  ;;  %v3726_v7 = vld [vmem:[#allocation38_spill] sm:$0xff] }
 0x334   : > { %1620 = vst.msk [vmem:[#allocation5 + $0x38] sm:$0xff] %vm1436_vm14, %v1604_v21  ;;  %v1599_v23 = vadd.f32 %v1570_v46, %v1551_v34  ;;  %v2288_v1 = vpop.eup %2287  ;;  %v1340_v34 = vld [vmem:[#allocation3] sm:$0xff]  ;;  %v3711_v21 = vld [vmem:[#allocation29_spill] sm:$0xff]  ;;  %v3712_v46 = vld [vmem:[#allocation31_spill] sm:$0xff] }
 0x335   : > { %v1584_v3 = vpop.xlane.xlu0 %1583 }
 0x336   : > { %1615 = vst.msk [vmem:[#allocation5 + $0x10] sm:$0xff] %vm1436_vm14, %v1599_v23  ;;  %v1606_v24 = vadd.f32 %v1584_v3, %v1558_v32  ;;  %v3713_v32 = vsub.f32 %v3711_v21, %v3712_v46 }
 0x337   : > { %v1574_v45 = vpop.xlane.xlu1 %1573  ;;  %v2290_v28 = vpop.eup %2289 }
 0x338   : > { %1622 = vst.msk [vmem:[#allocation5 + $0x48] sm:$0xff] %vm1436_vm14, %v1606_v24  ;;  %v1601_v11 = vadd.f32 %v1574_v45, %v1553_v51  ;;  %v1316_v23 = vmul.f32 1.442695, %v3713_v32  ;;  %v3714_v51 = vld [vmem:[#allocation30_spill] sm:$0xff]  ;;  %v3715_v24 = vld [vmem:[#allocation32_spill] sm:$0xff] }
 0x339   : > { %v1588_v17 = vpop.xlane.xlu0 %1587  ;;  %v3716_v45 = vsub.f32 %v3714_v51, %v3715_v24  ;;  %v1350_v32 = vld [vmem:[#allocation3 + $0x50] sm:$0xff]  ;;  %v3732_v24 = vld [vmem:[#allocation41_spill] sm:$0xff] }
 0x33a   : > { %1617 = vst.msk [vmem:[#allocation5 + $0x20] sm:$0xff] %vm1436_vm14, %v1601_v11  ;;  %v1608_v53 = vadd.f32 %v1588_v17, %v1560_v58  ;;  %v1357_v11 = vmul.f32 %v2288_v1, %v1341_v14  ;;  %2295 = vpow2.f32 %v1316_v23  ;;  %v3727_v1 = vld [vmem:[#allocation39_spill] sm:$0xff]  ;;  %v3730_v23 = vld [vmem:[#allocation40_spill] sm:$0xff] }
 0x33b   : > { %v1578_v38 = vpop.xlane.xlu1 %1577  ;;  %v1322_v58 = vmul.f32 1.442695, %v3716_v45  ;;  %v3733_v45 = vsub.f32 %v3352_v62, %v3732_v24  ;;  %v1745_v24 = vld [vmem:[#allocation5] sm:$0xff] (!%p2013_p11) }
 0x33c   : > { %1624 = vst.msk [vmem:[#allocation5 + $0x58] sm:$0xff] %vm1436_vm14, %v1608_v53  ;;  %v1603_v59 = vadd.f32 %v1578_v38, %v1555_v40  ;;  %v1356_v40 = vmul.f32 %v2290_v28, %v1340_v34  ;;  %v2292_v53 = vpop.eup %2291 }
 0x33d   : > { %v1592_v13 = vpop.xlane.xlu0 %1591  ;;  %2297 = vpow2.f32 %v1322_v58  ;;  %v1338_v58 = vmul.f32 1.442695, %v3733_v45 }
 0x33e   : > { %1619 = vst.msk [vmem:[#allocation5 + $0x30] sm:$0xff] %vm1436_vm14, %v1603_v59  ;;  %v1610_v39 = vadd.f32 %v1592_v13, %v1562_v22  ;;  %v1343_v59 = vld [vmem:[#allocation3 + $0x18] sm:$0xff] }
 0x33f   : > { %v1582_v25 = vpop.xlane.xlu1 %1581 }
 0x340   : > { %1626 = vst.msk [vmem:[#allocation5 + $0x68] sm:$0xff] %vm1436_vm14, %v1610_v39  ;;  %v1605_v0 = vadd.f32 %v1582_v25, %v1557_v35  ;;  %v3717_v35 = vld [vmem:[#allocation33_spill] sm:$0xff] }
 0x341   : > { %v3718_v39 = vsub.f32 %v3717_v35, %v3288_v61 }
 0x342   : > { %1621 = vst.msk [vmem:[#allocation5 + $0x40] sm:$0xff] %vm1436_vm14, %v1605_v0  ;;  %v1359_v0 = vmul.f32 %v2292_v53, %v1343_v59 }
 0x343   : > { %v1586_v55 = vpop.xlane.xlu1 %1585  ;;  %v1318_v25 = vmul.f32 1.442695, %v3718_v39 }
 0x344   : > { %v1607_v43 = vadd.f32 %v1586_v55, %v1559_v37 }
 0x345   : > { %2299 = vpow2.f32 %v1318_v25 }
 0x346   : > { %1623 = vst.msk [vmem:[#allocation5 + $0x50] sm:$0xff] %vm1436_vm14, %v1607_v43  ;;  %v2294_v43 = vpop.eup %2293 }
 0x347   : > { %v1590_v26 = vpop.xlane.xlu1 %1589  ;;  %v2296_v9 = vpop.eup %2295 }
 0x348   : > { %v1609_v29 = vadd.f32 %v1590_v26, %v1561_v54  ;;  %v1346_v54 = vld [vmem:[#allocation3 + $0x30] sm:$0xff]  ;;  %v3719_v26 = vld [vmem:[#allocation34_spill] sm:$0xff]  ;;  %v2298_v33 = vpop.eup %2297 }
 0x349   : > { %v1362_v52 = vmul.f32 %v2294_v43, %v1346_v54  ;;  %v1363_v4 = vmul.f32 %v2298_v33, %v1347_v41  ;;  %v1354_v54 = vld [vmem:[#allocation3 + $0x70] sm:$0xff] }
 0x34a   : > { %1625 = vst.msk [vmem:[#allocation5 + $0x60] sm:$0xff] %vm1436_vm14, %v1609_v29  ;;  %v3720_v29 = vsub.f32 %v3296_v63, %v3719_v26  ;;  %v1360_v63 = vmul.f32 %v2296_v9, %v1344_v27  ;;  %v1355_v27 = vld [vmem:[#allocation3 + $0x78] sm:$0xff] }
 0x34c   : > { %v1328_v47 = vmul.f32 1.442695, %v3720_v29 }
 0x34e   : > { %2301 = vpow2.f32 %v1328_v47 }
 0x34f   : > { %v2300_v5 = vpop.eup %2299  ;;  %2303 = vpow2.f32 %v1324_v31  ;;  %v1353_v31 = vld [vmem:[#allocation3 + $0x68] sm:$0xff] }
 0x350   : > { %2305 = vpow2.f32 %v1330_v16  ;;  %v1361_v60 = vmul.f32 %v2300_v5, %v1345_v57 }
 0x358   : > { %v2302_v46 = vpop.eup %2301 }
 0x35c   : > { %v1393_v36 = vpop.xlane.xlu0 %1392 }
 0x35d   : > { %v1422_v3 = vadd.f32 %v1393_v36, %v1358_v30  ;;  %v3728_v30 = vsub.f32 %v3726_v7, %v3727_v1  ;;  %v3729_v36 = vsub.f32 %v3334_v56, %v3343_v12  ;;  %v1348_v56 = vld [vmem:[#allocation3 + $0x40] sm:$0xff] }
 0x35f   : > { %1439 = vst.msk [vmem:[#allocation3 + $0x10] sm:$0xff] %vm1436_vm14, %v1422_v3  ;;  %v1391_v17 = vpop.xlane.xlu1 %1390  ;;  %v1326_v14 = vmul.f32 1.442695, %v3728_v30  ;;  %v1336_v34 = vmul.f32 1.442695, %v3729_v36  ;;  %v3731_v3 = vsub.f32 %v3345_v42, %v3730_v23 }
 0x360   : > { %v1421_v38 = vadd.f32 %v1391_v17, %v1357_v11  ;;  %v1389_v22 = vpop.xlane.xlu0 %1388  ;;  %v1366_v11 = vmul.f32 %v2302_v46, %v1350_v32  ;;  %v2304_v17 = vpop.eup %2303 }
 0x361   : > { %v1420_v13 = vadd.f32 %v1389_v22, %v1356_v40  ;;  %2307 = vpow2.f32 %v1326_v14  ;;  %v1332_v51 = vmul.f32 1.442695, %v3731_v3  ;;  %v2306_v12 = vpop.eup %2305  ;;  %v3734_v22 = vsub.f32 %v3366_v18, %v3374_v49  ;;  %v1650_v3 = vld [vmem:[#allocation2 + $0x8] sm:$0xff] (!%p2013_p11) }
 0x362   : > { %1438 = vst.msk [vmem:[#allocation3 + $0x8] sm:$0xff] %vm1436_vm14, %v1421_v38  ;;  %2309 = vpow2.f32 %v1336_v34  ;;  %v1351_v38 = vld [vmem:[#allocation3 + $0x58] sm:$0xff]  ;;  %v1364_v42 = vmul.f32 %v2304_v17, %v1348_v56  ;;  %v1746_v56 = vld [vmem:[#allocation5 + $0x8] sm:$0xff] (!%p2013_p11) }
 0x363   : > { %1437 = vst.msk [vmem:[#allocation3] sm:$0xff] %vm1436_vm14, %v1420_v13  ;;  %2311 = vpow2.f32 %v1332_v51  ;;  %v1334_v59 = vmul.f32 1.442695, %v3734_v22  ;;  %v1367_v35 = vmul.f32 %v2306_v12, %v1351_v38  ;;  %v1651_v12 = vld [vmem:[#allocation2 + $0x10] sm:$0xff] (!%p2013_p11)  ;;  %v1730_v22 = vld [vmem:[#allocation4 + $0x8] sm:$0xff] (!%p2013_p11) }
 0x364   : > { %v1395_v37 = vpop.xlane.xlu0 %1394  ;;  %2313 = vpow2.f32 %v1338_v58 }
 0x365   : > { %v1423_v55 = vadd.f32 %v1395_v37, %v1359_v0  ;;  %v1349_v0 = vld [vmem:[#allocation3 + $0x48] sm:$0xff]  ;;  %2315 = vpow2.f32 %v1334_v59 }
 0x366   : > { %v1667_v1 = vld [vmem:[#allocation3 + $0x10] sm:$0xff] (!%p2013_p11) }
 0x367   : > { %1440 = vst.msk [vmem:[#allocation3 + $0x18] sm:$0xff] %vm1436_vm14, %v1423_v55 }
 0x369   : > { %v1666_v7 = vld [vmem:[#allocation3 + $0x8] sm:$0xff] (!%p2013_p11) }
 0x36b   : > { %v1401_v61 = vpop.xlane.xlu1 %1400  ;;  %v2308_v62 = vpop.eup %2307 }
 0x36c   : > { %v1426_v8 = vadd.f32 %v1401_v61, %v1362_v52  ;;  %v2310_v55 = vpop.eup %2309  ;;  %v1365_v43 = vmul.f32 %v2308_v62, %v1349_v0  ;;  %v1352_v52 = vld [vmem:[#allocation3 + $0x60] sm:$0xff] }
 0x36d   : > { %v1370_v26 = vmul.f32 %v2310_v55, %v1354_v54  ;;  %v2312_v29 = vpop.eup %2311  ;;  %v1653_v0 = vld [vmem:[#allocation2 + $0x20] sm:$0xff] (!%p2013_p11)  ;;  %v1731_v54 = vld [vmem:[#allocation4 + $0x10] sm:$0xff] (!%p2013_p11) }
 0x36e   : > { %1443 = vst.msk [vmem:[#allocation3 + $0x30] sm:$0xff] %vm1436_vm14, %v1426_v8  ;;  %v2314_v9 = vpop.eup %2313  ;;  %v1368_v33 = vmul.f32 %v2312_v29, %v1352_v52  ;;  %v1668_v30 = vld [vmem:[#allocation3 + $0x18] sm:$0xff] (!%p2013_p11) }
 0x36f   : > { %v1397_v2 = vpop.xlane.xlu1 %1396  ;;  %v1371_v41 = vmul.f32 %v2314_v9, %v1355_v27  ;;  %v2316_v48 = vpop.eup %2315  ;;  %v1732_v9 = vld [vmem:[#allocation4 + $0x18] sm:$0xff] (!%p2013_p11)  ;;  %v1654_v27 = vld [vmem:[#allocation2 + $0x28] sm:$0xff] (!%p2013_p11) }
 0x370   : > { %v1424_v6 = vadd.f32 %v1397_v2, %v1360_v63  ;;  %v1403_v20 = vpop.xlane.xlu0 %1402  ;;  %v1369_v63 = vmul.f32 %v2316_v48, %v1353_v31  ;;  %v1655_v31 = vld [vmem:[#allocation2 + $0x30] sm:$0xff] (!%p2013_p11) }
 0x371   : > { %v1427_v19 = vadd.f32 %v1403_v20, %v1363_v4 }
 0x372   : > { %1441 = vst.msk [vmem:[#allocation3 + $0x20] sm:$0xff] %vm1436_vm14, %v1424_v6  ;;  %v1564_v6 = vld [vmem:[#allocation5 + $0x78] sm:$0xff] }
 0x373   : > { %1444 = vst.msk [vmem:[#allocation3 + $0x38] sm:$0xff] %vm1436_vm14, %v1427_v19  ;;  %v1665_v19 = vld [vmem:[#allocation3] sm:$0xff] (!%p2013_p11) }
 0x374   : > { %v1399_v28 = vpop.xlane.xlu0 %1398  ;;  %2317 = vlog2.f32 (!%p2013_p11), %v1665_v19  ;;  %v1751_v19 = vld [vmem:[#allocation5 + $0x30] sm:$0xff] (!%p2013_p11) }
 0x375   : > { %v1425_v21 = vadd.f32 %v1399_v28, %v1361_v60  ;;  %2319 = vlog2.f32 (!%p2013_p11), %v1666_v7  ;;  %v1671_v28 = vld [vmem:[#allocation3 + $0x30] sm:$0xff] (!%p2013_p11) }
 0x376   : > { %2321 = vlog2.f32 (!%p2013_p11), %v1667_v1 }
 0x377   : > { %1442 = vst.msk [vmem:[#allocation3 + $0x28] sm:$0xff] %vm1436_vm14, %v1425_v21  ;;  %2323 = vlog2.f32 (!%p2013_p11), %v1668_v30  ;;  %v1649_v21 = vld [vmem:[#allocation2] sm:$0xff] (!%p2013_p11) }
 0x379   : > { %v1669_v14 = vld [vmem:[#allocation3 + $0x20] sm:$0xff] (!%p2013_p11) }
 0x37a   : > { %2325 = vlog2.f32 (!%p2013_p11), %v1669_v14  ;;  %v1672_v36 = vld [vmem:[#allocation3 + $0x38] sm:$0xff] (!%p2013_p11)  ;;  %v1734_v14 = vld [vmem:[#allocation4 + $0x28] sm:$0xff] (!%p2013_p11) }
 0x37b   : > { %v1409_v40 = vpop.xlane.xlu1 %1408 }
 0x37c   : > { %v1430_v53 = vadd.f32 %v1409_v40, %v1366_v11  ;;  %v1729_v40 = vld [vmem:[#allocation4] sm:$0xff] (!%p2013_p11) }
 0x37e   : > { %1447 = vst.msk [vmem:[#allocation3 + $0x50] sm:$0xff] %vm1436_vm14, %v1430_v53  ;;  %v1670_v60 = vld [vmem:[#allocation3 + $0x28] sm:$0xff] (!%p2013_p11)  ;;  %v2318_v34 = vpop.eup (!%p2013_p11), %2317 }
 0x37f   : > { %v1405_v13 = vpop.xlane.xlu1 %1404  ;;  %2327 = vlog2.f32 (!%p2013_p11), %v1670_v60  ;;  %v2320_v32 = vpop.eup (!%p2013_p11), %2319  ;;  %v1682_v23 = vmul.f32 (!%p2013_p11), 0.6931472, %v2318_v34 }
 0x380   : > { %v1428_v39 = vadd.f32 %v1405_v13, %v1364_v42  ;;  %v1411_v25 = vpop.xlane.xlu0 %1410  ;;  %2329 = vlog2.f32 (!%p2013_p11), %v1671_v28  ;;  %v1684_v45 = vmul.f32 (!%p2013_p11), 0.6931472, %v2320_v32  ;;  %v2322_v11 = vpop.eup (!%p2013_p11), %2321  ;;  %v1652_v42 = vld [vmem:[#allocation2 + $0x18] sm:$0xff] (!%p2013_p11)  ;;  %v1735_v32 = vld [vmem:[#allocation4 + $0x30] sm:$0xff] (!%p2013_p11) }
 0x381   : > { %v1431_v37 = vadd.f32 %v1411_v25, %v1367_v35  ;;  %2331 = vlog2.f32 (!%p2013_p11), %v1672_v36  ;;  %v1713_v17 = vadd.f32 (!%p2013_p11), %v1682_v23, %v1649_v21  ;;  %v2324_v53 = vpop.eup (!%p2013_p11), %2323  ;;  %v1686_v59 = vmul.f32 (!%p2013_p11), 0.6931472, %v2322_v11  ;;  %v1752_v28 = vld [vmem:[#allocation5 + $0x38] sm:$0xff] (!%p2013_p11)  ;;  %v1657_v36 = vld [vmem:[#allocation2 + $0x40] sm:$0xff] (!%p2013_p11) }
 0x382   : > { %1445 = vst.msk [vmem:[#allocation3 + $0x40] sm:$0xff] %vm1436_vm14, %v1428_v39  ;;  %v1714_v38 = vadd.f32 (!%p2013_p11), %v1684_v45, %v1650_v3  ;;  %v1747_v39 = vld [vmem:[#allocation5 + $0x10] sm:$0xff] (!%p2013_p11)  ;;  %v1688_v25 = vmul.f32 (!%p2013_p11), 0.6931472, %v2324_v53  ;;  %v1753_v11 = vld [vmem:[#allocation5 + $0x40] sm:$0xff] (!%p2013_p11) }
 0x383   : > { %1448 = vst.msk [vmem:[#allocation3 + $0x58] sm:$0xff] %vm1436_vm14, %v1431_v37  ;;  %v1761_v62 = vmul.f32 (!%p2013_p11), %v1745_v24, %v1713_v17 }
 0x384   : > { %v1407_v18 = vpop.xlane.xlu0 %1406  ;;  %v2326_v35 = vpop.eup (!%p2013_p11), %2325  ;;  %v1762_v55 = vmul.f32 (!%p2013_p11), %v1746_v56, %v1714_v38  ;;  %v1716_v52 = vadd.f32 (!%p2013_p11), %v1688_v25, %v1652_v42  ;;  %v1754_v38 = vld [vmem:[#allocation5 + $0x48] sm:$0xff] (!%p2013_p11) }
 0x385   : > { %v1429_v49 = vadd.f32 %v1407_v18, %v1365_v43  ;;  %v1675_v58 = vld [vmem:[#allocation3 + $0x50] sm:$0xff] (!%p2013_p11)  ;;  %v1715_v43 = vadd.f32 (!%p2013_p11), %v1686_v59, %v1651_v12  ;;  %v1748_v18 = vld [vmem:[#allocation5 + $0x18] sm:$0xff] (!%p2013_p11) }
 0x387   : > { %1446 = vst.msk [vmem:[#allocation3 + $0x48] sm:$0xff] %vm1436_vm14, %v1429_v49  ;;  %v1417_v47 = vpop.xlane.xlu1 %1416  ;;  %v1690_v49 = vmul.f32 (!%p2013_p11), 0.6931472, %v2326_v35 }
 0x388   : > { %v1434_v61 = vadd.f32 %v1417_v47, %v1370_v26  ;;  %v1777_v47 = vsub.f32 (!%p2013_p11), %v1729_v40, %v1761_v62  ;;  %v1659_v40 = vld [vmem:[#allocation2 + $0x50] sm:$0xff] (!%p2013_p11) }
 0x389   : > { %v1673_v46 = vld [vmem:[#allocation3 + $0x40] sm:$0xff] (!%p2013_p11)  ;;  %v2328_v29 = vpop.eup (!%p2013_p11), %2327  ;;  %v1717_v48 = vadd.f32 (!%p2013_p11), %v1690_v49, %v1653_v0  ;;  %v1755_v62 = vld [vmem:[#allocation5 + $0x50] sm:$0xff] (!%p2013_p11) }
 0x38a   : > { %1451 = vst.msk [vmem:[#allocation3 + $0x70] sm:$0xff] %vm1436_vm14, %v1434_v61  ;;  %2333 = vlog2.f32 (!%p2013_p11), %v1673_v46  ;;  %v1676_v13 = vld [vmem:[#allocation3 + $0x58] sm:$0xff] (!%p2013_p11)  ;;  %v1749_v61 = vld [vmem:[#allocation5 + $0x20] sm:$0xff] (!%p2013_p11)  ;;  %1793 = vst.msk [vmem:[%s2796_s13] sm:$0xff] (!%p2013_p11), %vm1436_vm14, %v1777_v47 }
 0x38b   : > { %v1413_v8 = vpop.xlane.xlu1 %1412  ;;  %v1756_v47 = vld [vmem:[#allocation5 + $0x58] sm:$0xff] (!%p2013_p11) }
 0x38c   : > { %v1432_v10 = vadd.f32 %v1413_v8, %v1368_v33  ;;  %v1419_v15 = vpop.xlane.xlu0 %1418  ;;  %v2330_v33 = vpop.eup (!%p2013_p11), %2329  ;;  %v1778_v8 = vsub.f32 (!%p2013_p11), %v1730_v22, %v1762_v55  ;;  %v1738_v55 = vld [vmem:[#allocation4 + $0x48] sm:$0xff] (!%p2013_p11) }
 0x38d   : > { %v1435_v50 = vadd.f32 %v1419_v15, %v1371_v41  ;;  %v1763_v41 = vmul.f32 (!%p2013_p11), %v1747_v39, %v1715_v43  ;;  %v1692_v15 = vmul.f32 (!%p2013_p11), 0.6931472, %v2328_v29  ;;  %v1660_v39 = vld [vmem:[#allocation2 + $0x58] sm:$0xff] (!%p2013_p11)  ;;  %v1739_v29 = vld [vmem:[#allocation4 + $0x50] sm:$0xff] (!%p2013_p11) }
 0x38e   : > { %1449 = vst.msk [vmem:[#allocation3 + $0x60] sm:$0xff] %vm1436_vm14, %v1432_v10  ;;  %v1674_v51 = vld [vmem:[#allocation3 + $0x48] sm:$0xff] (!%p2013_p11)  ;;  %v1733_v10 = vld [vmem:[#allocation4 + $0x20] sm:$0xff] (!%p2013_p11)  ;;  %1794 = vst.msk [vmem:[%s2796_s13 + $0x8] sm:$0xff] (!%p2013_p11), %vm1436_vm14, %v1778_v8 }
 0x38f   : > { %1452 = vst.msk [vmem:[#allocation3 + $0x78] sm:$0xff] %vm1436_vm14, %v1435_v50  ;;  %v1594_v16 = vpop.xlane.xlu1 %1593  ;;  %2335 = vlog2.f32 (!%p2013_p11), %v1674_v51  ;;  %v1658_v51 = vld [vmem:[#allocation2 + $0x48] sm:$0xff] (!%p2013_p11)  ;;  %v1757_v8 = vld [vmem:[#allocation5 + $0x60] sm:$0xff] (!%p2013_p11) }
 0x390   : > { %v1611_v2 = vadd.f32 %v1594_v16, %v1563_v44  ;;  %v1415_v4 = vpop.xlane.xlu0 %1414  ;;  %2337 = vlog2.f32 (!%p2013_p11), %v1675_v58  ;;  %v2332_v44 = vpop.eup (!%p2013_p11), %2331  ;;  %v1764_v16 = vmul.f32 (!%p2013_p11), %v1748_v18, %v1716_v52  ;;  %v1736_v58 = vld [vmem:[#allocation4 + $0x38] sm:$0xff] (!%p2013_p11)  ;;  %v1661_v18 = vld [vmem:[#allocation2 + $0x60] sm:$0xff] (!%p2013_p11) }
 0x391   : > { %v1433_v5 = vadd.f32 %v1415_v4, %v1369_v63  ;;  %1648 = sbr.rel (%p2013_p11) target bundleno = 945 (0x3b1), region = 60  ;;  %2339 = vlog2.f32 (!%p2013_p11), %v1676_v13  ;;  %v1679_v50 = vld [vmem:[#allocation3 + $0x70] sm:$0xff] (!%p2013_p11)  ;;  %v1750_v63 = vld [vmem:[#allocation5 + $0x28] sm:$0xff] (!%p2013_p11)  ;;  %v1656_v4 = vld [vmem:[#allocation2 + $0x38] sm:$0xff] (!%p2013_p11)  ;;  %v1696_v7 = vmul.f32 (!%p2013_p11), 0.6931472, %v2332_v44 }
 0x392   : > { %1627 = vst.msk [vmem:[#allocation5 + $0x70] sm:$0xff] %vm1436_vm14, %v1611_v2  ;;  %v1694_v2 = vmul.f32 (!%p2013_p11), 0.6931472, %v2330_v33  ;;  %v1780_v30 = vsub.f32 (!%p2013_p11), %v1732_v9, %v1764_v16  ;;  %v1737_v13 = vld [vmem:[#allocation4 + $0x40] sm:$0xff] (!%p2013_p11)  ;;  %v1662_v9 = vld [vmem:[#allocation2 + $0x68] sm:$0xff] (!%p2013_p11)  ;;  %v1663_v44 = vld [vmem:[#allocation2 + $0x70] sm:$0xff] (!%p2013_p11) }
 0x393   : > { %1450 = vst.msk [vmem:[#allocation3 + $0x68] sm:$0xff] %vm1436_vm14, %v1433_v5  ;;  %v1720_v23 = vadd.f32 (!%p2013_p11), %v1696_v7, %v1656_v4  ;;  %v1664_v7 = vld [vmem:[#allocation2 + $0x78] sm:$0xff] (!%p2013_p11) }
 0x394   : > { %v1596_v20 = vpop.xlane.xlu0 %1595  ;;  %v2334_v1 = vpop.eup (!%p2013_p11), %2333  ;;  %v1719_v60 = vadd.f32 (!%p2013_p11), %v1694_v2, %v1655_v31  ;;  %1796 = vst.msk [vmem:[%s2796_s13 + $0x18] sm:$0xff] (!%p2013_p11), %vm1436_vm14, %v1780_v30  ;;  %v1741_v2 = vld [vmem:[#allocation4 + $0x60] sm:$0xff] (!%p2013_p11) }
 0x395   : > { %v1612_v57 = vadd.f32 %v1596_v20, %v1564_v6  ;;  %v1677_v37 = vld [vmem:[#allocation3 + $0x60] sm:$0xff] (!%p2013_p11)  ;;  %v1779_v6 = vsub.f32 (!%p2013_p11), %v1731_v54, %v1763_v41  ;;  %v1765_v20 = vmul.f32 (!%p2013_p11), %v1749_v61, %v1717_v48  ;;  %v1698_v3 = vmul.f32 (!%p2013_p11), 0.6931472, %v2334_v1 }
 0x396   : > { %2341 = vlog2.f32 (!%p2013_p11), %v1677_v37  ;;  %v1680_v5 = vld [vmem:[#allocation3 + $0x78] sm:$0xff] (!%p2013_p11)  ;;  %v1767_v45 = vmul.f32 (!%p2013_p11), %v1751_v19, %v1719_v60  ;;  %v1768_v12 = vmul.f32 (!%p2013_p11), %v1752_v28, %v1720_v23 }
 0x397   : > { %1628 = vst.msk [vmem:[#allocation5 + $0x78] sm:$0xff] %vm1436_vm14, %v1612_v57  ;;  %v1718_v57 = vadd.f32 (!%p2013_p11), %v1692_v15, %v1654_v27  ;;  %1795 = vst.msk [vmem:[%s2796_s13 + $0x10] sm:$0xff] (!%p2013_p11), %vm1436_vm14, %v1779_v6  ;;  %v1781_v21 = vsub.f32 (!%p2013_p11), %v1733_v10, %v1765_v20  ;;  %v1721_v53 = vadd.f32 (!%p2013_p11), %v1698_v3, %v1657_v36  ;;  %v1740_v15 = vld [vmem:[#allocation4 + $0x58] sm:$0xff] (!%p2013_p11)  ;;  %v1743_v36 = vld [vmem:[#allocation4 + $0x70] sm:$0xff] (!%p2013_p11) }
 0x398   : > { %v1783_v42 = vsub.f32 %v1735_v32, %v1767_v45  ;;  %v1784_v0 = vsub.f32 %v1736_v58, %v1768_v12  ;;  %v1744_v23 = vld [vmem:[#allocation4 + $0x78] sm:$0xff] }
 0x399   : > { %v2336_v34 = vpop.eup %2335  ;;  %v1766_v46 = vmul.f32 %v1750_v63, %v1718_v57  ;;  %1797 = vst.msk [vmem:[%s2796_s13 + $0x20] sm:$0xff] %vm1436_vm14, %v1781_v21  ;;  %v1769_v37 = vmul.f32 %v1753_v11, %v1721_v53  ;;  %v1742_v57 = vld [vmem:[#allocation4 + $0x68] sm:$0xff]  ;;  %v1759_v19 = vld [vmem:[#allocation5 + $0x70] sm:$0xff] }
 0x39a   : > { %v1678_v26 = vld [vmem:[#allocation3 + $0x68] sm:$0xff]  ;;  %v2338_v24 = vpop.eup %2337  ;;  %v1700_v17 = vmul.f32 0.6931472, %v2336_v34  ;;  %1799 = vst.msk [vmem:[%s2796_s13 + $0x30] sm:$0xff] %vm1436_vm14, %v1783_v42  ;;  %1800 = vst.msk [vmem:[%s2796_s13 + $0x38] sm:$0xff] %vm1436_vm14, %v1784_v0 }
 0x39b   : > { %2343 = vlog2.f32 %v1678_v26  ;;  %v1782_v56 = vsub.f32 %v1734_v14, %v1766_v46  ;;  %v1702_v22 = vmul.f32 0.6931472, %v2338_v24  ;;  %v2340_v59 = vpop.eup %2339  ;;  %v1785_v61 = vsub.f32 %v1737_v13, %v1769_v37 }
 0x39c   : > { %2345 = vlog2.f32 %v1679_v50  ;;  %v1722_v35 = vadd.f32 %v1700_v17, %v1658_v51  ;;  %v1704_v54 = vmul.f32 0.6931472, %v2340_v59  ;;  %v1758_v50 = vld [vmem:[#allocation5 + $0x68] sm:$0xff] }
 0x39d   : > { %2347 = vlog2.f32 %v1680_v5  ;;  %1798 = vst.msk [vmem:[%s2796_s13 + $0x28] sm:$0xff] %vm1436_vm14, %v1782_v56  ;;  %v1723_v43 = vadd.f32 %v1702_v22, %v1659_v40  ;;  %1801 = vst.msk [vmem:[%s2796_s13 + $0x40] sm:$0xff] %vm1436_vm14, %v1785_v61 }
 0x39e   : > { %v1770_v26 = vmul.f32 %v1754_v38, %v1722_v35  ;;  %v1724_v33 = vadd.f32 %v1704_v54, %v1660_v39  ;;  %v1760_v34 = vld [vmem:[#allocation5 + $0x78] sm:$0xff] }
 0x39f   : > { %v1771_v27 = vmul.f32 %v1755_v62, %v1723_v43 }
 0x3a0   : > { %v2342_v25 = vpop.eup %2341  ;;  %v1786_v10 = vsub.f32 %v1738_v55, %v1770_v26  ;;  %v1772_v63 = vmul.f32 %v1756_v47, %v1724_v33 }
 0x3a1   : > { %v1706_v52 = vmul.f32 0.6931472, %v2342_v25  ;;  %v1787_v16 = vsub.f32 %v1739_v29, %v1771_v27 }
 0x3a2   : > { %1802 = vst.msk [vmem:[%s2796_s13 + $0x48] sm:$0xff] %vm1436_vm14, %v1786_v10  ;;  %v1788_v1 = vsub.f32 %v1740_v15, %v1772_v63 }
 0x3a3   : > { %v1725_v31 = vadd.f32 %v1706_v52, %v1661_v18  ;;  %1803 = vst.msk [vmem:[%s2796_s13 + $0x50] sm:$0xff] %vm1436_vm14, %v1787_v16 }
 0x3a4   : > { %1804 = vst.msk [vmem:[%s2796_s13 + $0x58] sm:$0xff] %vm1436_vm14, %v1788_v1 }
 0x3a5   : > { %v2344_v49 = vpop.eup %2343  ;;  %v1773_v20 = vmul.f32 %v1757_v8, %v1725_v31 }
 0x3a6   : > { %v1708_v41 = vmul.f32 0.6931472, %v2344_v49  ;;  %v2346_v48 = vpop.eup %2345 }
 0x3a7   : > { %v1710_v5 = vmul.f32 0.6931472, %v2346_v48  ;;  %v2348_v6 = vpop.eup %2347  ;;  %v1789_v28 = vsub.f32 %v1741_v2, %v1773_v20 }
 0x3a8   : > { %v1726_v4 = vadd.f32 %v1708_v41, %v1662_v9  ;;  %v1712_v60 = vmul.f32 0.6931472, %v2348_v6 }
 0x3a9   : > { %v1727_v14 = vadd.f32 %v1710_v5, %v1663_v44  ;;  %1805 = vst.msk [vmem:[%s2796_s13 + $0x60] sm:$0xff] %vm1436_vm14, %v1789_v28 }
 0x3aa   : > { %v1774_v30 = vmul.f32 %v1758_v50, %v1726_v4  ;;  %v1728_v32 = vadd.f32 %v1712_v60, %v1664_v7 }
 0x3ab   : > { %v1775_v46 = vmul.f32 %v1759_v19, %v1727_v14 }
 0x3ac   : > { %v1790_v21 = vsub.f32 %v1742_v57, %v1774_v30  ;;  %v1776_v51 = vmul.f32 %v1760_v34, %v1728_v32 }
 0x3ad   : > { %v1791_v3 = vsub.f32 %v1743_v36, %v1775_v46 }
 0x3ae   : > { %1806 = vst.msk [vmem:[%s2796_s13 + $0x68] sm:$0xff] %vm1436_vm14, %v1790_v21  ;;  %v1792_v24 = vsub.f32 %v1744_v23, %v1776_v51 }
 0x3af   : > { %1807 = vst.msk [vmem:[%s2796_s13 + $0x70] sm:$0xff] %vm1436_vm14, %v1791_v3 }
 0x3b0   : > { %1808 = vst.msk [vmem:[%s2796_s13 + $0x78] sm:$0xff] %vm1436_vm14, %v1792_v24 }
 0x3b1 PF: > { %s22_s7 = sadd.s32 1, %s2503_s7   ;;  %s3735_s27 = sld [smem:[#allocation12_spill]] }
 0x3b2   : > { %p19_p0 = scmp.ge.s32.totalorder %s22_s7, 6   ;;  %s3736_s26 = sld [smem:[#allocation17_spill]] }
 0x3b3   : > { %s3737_s9 = sld [smem:[#allocation13_spill]]  ;;  %s3738_s28 = sld [smem:[#allocation14_spill]] }
 0x3b4   : > { %s3739_s29 = sld [smem:[#allocation15_spill]]  ;;  %s3740_s30 = sld [smem:[#allocation16_spill]] }
 0x3b5   : > { %s3741_s21 = smov %s2467_s22  ;;  %s3742_s22 = smov %s2471_s23 }
 0x3b6   : > { %s3743_s23 = smov %s2703_s24  ;;  %s3744_s24 = smov %s2479_s25 }
 0x3b7   : > { %s3745_s25 = smov %s3735_s27  ;;  %21 = sbr.rel (!%p19_p0) target bundleno = 14 (0xe), region = 117 }
 0x3b9   : > { %s3746_s27 = smov %s3737_s9 }
 0x3be   :  { %1831 = vsyncpa [#allocation7], 1 }
 0x3bf   :  { %1833 = vsyncpa [#allocation7 + $0x1], 1 }
 0x3c0   :  { %1834 = vsyncpa [#allocation9], 1 }
 0x3c1   :  { %1836 = vsyncpa [#allocation9 + $0x1], 1 }

</bundles_post_ra>
